<compile_context>
chip_gen: v7x
topology: tpu7x:2x2x1
jax: 0.10.0
libtpu: 0.0.40
codegen_flags: <defaults>
</compile_context>

<pallas_src>
import functools

import jax
import jax.numpy as jnp
import numpy as np
from jax.experimental import pallas as pl
from jax.experimental.pallas import tpu as pltpu


def _round_up(x, m):
    return (x + m - 1) // m * m


# ------------------------------ Pallas kernel --------------------------------

def _basic_block_kernel(x_ref, w1_ref, w2_ref, s1_ref, b1_ref, s2_ref, b2_ref,
                        mask_ref, o_ref, *, W, PF, ML, OW):
    """G images per grid step, packed back-to-back along the 128-lane axis.

    Packed coordinate t in [0, G*L): image g = t // L, padded-flat pixel q = t % L of a
    zero-padded (H+2, W+2) image flattened row-major (L = (H+2)*(W+2)).  A 3x3 tap
    (dy, dx) is a lane offset (dy-1)*(W+2) + (dx-1), |offset| <= PF = W+3.  Interior
    output pixels only ever read their own image's columns, so images can be packed
    with no gap; the interior mask zeroes the pad ring / cross-image bleed before conv2.
    """
    Wp = W + 2
    OW1 = OW + 2 * PF                   # conv1 output window (covers conv2's tap reach)
    offs = [(dy - 1) * Wp + (dx - 1) for dy in range(3) for dx in range(3)]

    xt = x_ref[...]                     # (Cin, WTOT) f32  (residual stays f32)
    xb = xt.astype(jnp.bfloat16)        # cast ONCE, before the 9x im2col expansion

    # ---- conv1 + bn1 + relu1 over the extended window [-PF, OW+PF) ----------
    p1 = jnp.concatenate(
        [xb[:, ML - PF + o: ML - PF + o + OW1] for o in offs], axis=0)
    acc1 = jnp.dot(w1_ref[...], p1, preferred_element_type=jnp.float32)   # (Cb, OW1) f32
    y1 = jnp.maximum(acc1 * s1_ref[...] + b1_ref[...], 0.0) * mask_ref[...]
    y1b = y1.astype(jnp.bfloat16)       # cast ONCE before the second im2col

    # ---- conv2 + bn2 + residual add + relu2 ----------------------------------
    p2 = jnp.concatenate(
        [y1b[:, PF + o: PF + o + OW] for o in offs], axis=0)
    acc2 = jnp.dot(w2_ref[...], p2, preferred_element_type=jnp.float32)   # (Cb, OW) f32
    identity = xt[:, ML: ML + OW]       # 128-aligned f32 slice (no lane rotation)
    o_ref[...] = jnp.maximum(acc2 * s2_ref[...] + b2_ref[...] + identity,
                             0.0).astype(o_ref.dtype)


# ------------------------------- JAX wrapper ----------------------------------

def _fold_bn(gamma, beta, mean, var, eps=1e-5):
    scale = gamma / jnp.sqrt(var + eps)
    bias = beta - mean * scale
    return (scale.reshape(-1, 1).astype(jnp.float32),
            bias.reshape(-1, 1).astype(jnp.float32))


def _pick_images_per_step(n, max_g=8):
    """Largest divisor of n (<= max_g) that still leaves >= 2 grid steps (pipelining /
    v7x 2-TC sharding); falls back to 1."""
    best = 1
    for g in range(1, min(n, max_g) + 1):
        if n % g == 0 and (n // g >= 2 or n == 1):
            best = g
    return best


def basic_block_forward(x_nchw, params, images_per_step=None):
    """Fused BasicBlock forward (stride=1, downsample=None).  x: NCHW float32."""
    w1, w2 = params["w1"], params["w2"]          # (Cout, Cin, 3, 3) PyTorch layout
    N, Cin, H, W = x_nchw.shape
    Cb = w1.shape[0]
    if Cin != Cb:
        raise NotImplementedError(
            "fused kernel assumes stride=1 / downsample=None (Cin == Cout)")

    G = images_per_step or _pick_images_per_step(N)
    assert N % G == 0, "batch must be divisible by images_per_step"
    NS = N // G                                  # grid steps

    Wp = W + 2
    L = (H + 2) * Wp                             # flattened padded image length
    PF = Wp + 1                                  # max |3x3 tap flat offset|
    OW = _round_up(G * L, 128)                   # lane-dense packed output width
    OW1 = OW + 2 * PF                            # conv1 output window width
    ML = _round_up(2 * PF, 128)                  # aligned left margin (covers tap reach)
    MR = _round_up(2 * PF, 128)                  # right margin
    WTOT = ML + OW + MR                          # per-channel input width

    s1, b1 = _fold_bn(params["g1"], params["be1"], params["m1"], params["v1"])
    s2, b2 = _fold_bn(params["g2"], params["be2"], params["m2"], params["v2"])

    # weights: (Cout, Cin, 3, 3) -> (Cout, 9*Cin), tap-major, bf16 for the MXU.
    w1t = jnp.transpose(w1, (0, 2, 3, 1)).reshape(Cb, 9 * Cin).astype(jnp.bfloat16)
    w2t = jnp.transpose(w2, (0, 2, 3, 1)).reshape(Cb, 9 * Cb).astype(jnp.bfloat16)

    # Pack G images back-to-back along the flattened padded-spatial (lane) axis.
    xp = jnp.pad(x_nchw, ((0, 0), (0, 0), (1, 1), (1, 1))).reshape(N, Cin, L)
    xg = (xp.reshape(NS, G, Cin, L).transpose(0, 2, 1, 3)
          .reshape(NS, Cin, G * L).astype(jnp.float32))
    x_big = jnp.pad(xg, ((0, 0), (0, 0), (ML, WTOT - ML - G * L)))   # (NS, Cin, WTOT)

    # Interior mask in conv1-window coordinates: 1.0 on interior pixels of every image,
    # 0.0 on pad rings, lane-padding columns and the +-PF extension.
    hh = jnp.arange(H + 2)
    ww = jnp.arange(Wp)
    m2d = ((hh[:, None] >= 1) & (hh[:, None] <= H) &
           (ww[None, :] >= 1) & (ww[None, :] <= W)).astype(jnp.float32)
    mask = jnp.pad(jnp.tile(m2d.reshape(L), G),
                   (PF, OW1 - PF - G * L)).reshape(1, OW1)

    kernel = functools.partial(_basic_block_kernel, W=W, PF=PF, ML=ML, OW=OW)

    flops = 2 * NS * (Cb * OW1 * 9 * Cin + Cb * OW * 9 * Cb)
    bytes_accessed = (x_big.size * 4 + NS * Cb * OW * 4
                      + (w1t.size + w2t.size) * 2 + 4 * Cb * 4 + OW1 * 4)

    # VMEM budget: double-buffered in/out blocks + resident weights/mask + kernel values.
    vmem_est = (2 * Cin * WTOT * 4 + 2 * Cb * OW * 4
                + 2 * (w1t.size + w2t.size) * 2 + 2 * OW1 * 4
                + Cin * WTOT * 2                    # xb (bf16)
                + 9 * Cin * OW1 * 2                 # p1 (bf16)
                + 2 * Cb * OW1 * 4 + Cb * OW1 * 2   # acc1, y1, y1b
                + 9 * Cb * OW * 2                   # p2 (bf16)
                + 2 * Cb * OW * 4)                  # acc2 / epilogue
    vmem_limit = int(min(max(2 * vmem_est, 16 * 2 ** 20), 64 * 2 ** 20))

    out_flat = pl.pallas_call(
        kernel,
        out_shape=jax.ShapeDtypeStruct((NS, Cb, OW), jnp.float32),
        grid=(NS,),
        in_specs=[
            pl.BlockSpec((None, Cin, WTOT), lambda n: (n, 0, 0)),   # packed images
            pl.BlockSpec((Cb, 9 * Cin), lambda n: (0, 0)),          # w1 (resident)
            pl.BlockSpec((Cb, 9 * Cb), lambda n: (0, 0)),           # w2 (resident)
            pl.BlockSpec((Cb, 1), lambda n: (0, 0)),                # bn1 scale
            pl.BlockSpec((Cb, 1), lambda n: (0, 0)),                # bn1 bias
            pl.BlockSpec((Cb, 1), lambda n: (0, 0)),                # bn2 scale
            pl.BlockSpec((Cb, 1), lambda n: (0, 0)),                # bn2 bias
            pl.BlockSpec((1, OW1), lambda n: (0, 0)),               # interior mask
        ],
        out_specs=pl.BlockSpec((None, Cb, OW), lambda n: (n, 0, 0)),
        compiler_params=pltpu.CompilerParams(
            dimension_semantics=("parallel",),
            vmem_limit_bytes=vmem_limit),
        cost_estimate=pl.CostEstimate(flops=flops, transcendentals=0,
                                      bytes_accessed=bytes_accessed),
    )(x_big, w1t, w2t, s1, b1, s2, b2, mask)

    # Unpack: (NS, Cb, OW) -> discard lane padding, split images, back to NCHW interior.
    out = out_flat[:, :, :G * L].reshape(NS, Cb, G, L).transpose(0, 2, 1, 3)
    return out.reshape(N, Cb, H + 2, Wp)[:, :, 1:H + 1, 1:W + 1]


# -------------------------------- reference -----------------------------------

def _ref_forward(x, params, conv_dtype=jnp.bfloat16, eps=1e-5):
    """Same numerics as the kernel: bf16 conv operands, f32 accumulate + f32 epilogue."""
    def conv3x3(inp, w):
        return jax.lax.conv_general_dilated(
            inp.astype(conv_dtype), w.astype(conv_dtype),
            window_strides=(1, 1), padding=((1, 1), (1, 1)),
            dimension_numbers=("NCHW", "OIHW", "NCHW"),
            preferred_element_type=jnp.float32)

    def bn(t, g, be, m, v):
        sc = g / jnp.sqrt(v + eps)
        return t * sc[None, :, None, None] + (be - m * sc)[None, :, None, None]

    out = jax.nn.relu(bn(conv3x3(x, params["w1"]),
                         params["g1"], params["be1"], params["m1"], params["v1"]))
    out = bn(conv3x3(out, params["w2"]),
             params["g2"], params["be2"], params["m2"], params["v2"])
    return jax.nn.relu(out + x)


# ----------------------------------- main --------------------------------------

if __name__ == "__main__":
    key = jax.random.PRNGKey(0)
    N, C, H, W = 4, 8, 16, 16        # in_ch = block_ch = 8, stride = 1
    ks = jax.random.split(key, 11)

    x = jax.random.normal(ks[0], (N, C, H, W), jnp.float32)

    params = {
        "w1": jax.random.normal(ks[1], (C, C, 3, 3), jnp.float32) * 0.1,
        "w2": jax.random.normal(ks[2], (C, C, 3, 3), jnp.float32) * 0.1,
        "g1": jax.random.normal(ks[3], (C,), jnp.float32) * 0.2 + 1.0,
        "be1": jax.random.normal(ks[4], (C,), jnp.float32) * 0.1,
        "m1": jax.random.normal(ks[5], (C,), jnp.float32) * 0.1,
        "v1": jnp.abs(jax.random.normal(ks[6], (C,), jnp.float32)) * 0.2 + 0.5,
        "g2": jax.random.normal(ks[7], (C,), jnp.float32) * 0.2 + 1.0,
        "be2": jax.random.normal(ks[8], (C,), jnp.float32) * 0.1,
        "m2": jax.random.normal(ks[9], (C,), jnp.float32) * 0.1,
        "v2": jnp.abs(jax.random.normal(ks[10], (C,), jnp.float32)) * 0.2 + 0.5,
    }

    fwd = jax.jit(basic_block_forward)
    out = jax.block_until_ready(fwd(x, params))

    ref = jax.block_until_ready(_ref_forward(x, params))
    # Tolerance reflects f32-accumulation-order differences only (both paths use bf16
    # MXU operands with f32 accumulation), so 2e-3 is conservative.
    np.testing.assert_allclose(np.asarray(out), np.asarray(ref), atol=2e-3, rtol=2e-3)

    print("KERNEL_OK")
</pallas_src>

<mosaic_0001>
module attributes {stable_mosaic.version = 11 : i64} {
  func.func @_basic_block_kernel(%arg0: i32, %arg1: memref<1x8x1024xf32, #tpu.memory_space<vmem>>, %arg2: memref<8x72xbf16, #tpu.memory_space<vmem>>, %arg3: memref<8x72xbf16, #tpu.memory_space<vmem>>, %arg4: memref<8x1xf32, #tpu.memory_space<vmem>>, %arg5: memref<8x1xf32, #tpu.memory_space<vmem>>, %arg6: memref<8x1xf32, #tpu.memory_space<vmem>>, %arg7: memref<8x1xf32, #tpu.memory_space<vmem>>, %arg8: memref<1x806xf32, #tpu.memory_space<vmem>>, %arg9: memref<1x8x768xf32, #tpu.memory_space<vmem>>) attributes {dimension_semantics = [#tpu.dimension_semantics<parallel>], iteration_bounds = array<i64: 2>, scalar_prefetch = 0 : i64, scratch_operands = 0 : i64, tpu.core_type = #tpu.core_type<tc>, window_params = [{transform_indices = @transform_0, window_bounds = array<i64: 1, 8, 1024>}, {pipeline_mode = #tpu.pipeline_mode<synchronous>, transform_indices = @transform_1, window_bounds = array<i64: 8, 72>}, {pipeline_mode = #tpu.pipeline_mode<synchronous>, transform_indices = @transform_2, window_bounds = array<i64: 8, 72>}, {pipeline_mode = #tpu.pipeline_mode<synchronous>, transform_indices = @transform_3, window_bounds = array<i64: 8, 1>}, {pipeline_mode = #tpu.pipeline_mode<synchronous>, transform_indices = @transform_4, window_bounds = array<i64: 8, 1>}, {pipeline_mode = #tpu.pipeline_mode<synchronous>, transform_indices = @transform_5, window_bounds = array<i64: 8, 1>}, {pipeline_mode = #tpu.pipeline_mode<synchronous>, transform_indices = @transform_6, window_bounds = array<i64: 8, 1>}, {pipeline_mode = #tpu.pipeline_mode<synchronous>, transform_indices = @transform_7, window_bounds = array<i64: 1, 806>}, {transform_indices = @transform_8, window_bounds = array<i64: 1, 8, 768>}]} {
    %c0 = arith.constant 0 : index
    %c0_0 = arith.constant 0 : index
    %c0_1 = arith.constant 0 : index
    %0 = vector.load %arg1[%c0, %c0_0, %c0_1] : memref<1x8x1024xf32, #tpu.memory_space<vmem>>, vector<1x8x1024xf32>
    %1 = vector.shape_cast %0 : vector<1x8x1024xf32> to vector<8x1024xf32>
    %2 = arith.truncf %1 : vector<8x1024xf32> to vector<8x1024xbf16>
    %3 = vector.extract_strided_slice %2 {offsets = [0, 90], sizes = [8, 806], strides = [1, 1]} : vector<8x1024xbf16> to vector<8x806xbf16>
    %4 = vector.extract_strided_slice %2 {offsets = [0, 91], sizes = [8, 806], strides = [1, 1]} : vector<8x1024xbf16> to vector<8x806xbf16>
    %5 = vector.extract_strided_slice %2 {offsets = [0, 92], sizes = [8, 806], strides = [1, 1]} : vector<8x1024xbf16> to vector<8x806xbf16>
    %6 = vector.extract_strided_slice %2 {offsets = [0, 108], sizes = [8, 806], strides = [1, 1]} : vector<8x1024xbf16> to vector<8x806xbf16>
    %7 = vector.extract_strided_slice %2 {offsets = [0, 109], sizes = [8, 806], strides = [1, 1]} : vector<8x1024xbf16> to vector<8x806xbf16>
    %8 = vector.extract_strided_slice %2 {offsets = [0, 110], sizes = [8, 806], strides = [1, 1]} : vector<8x1024xbf16> to vector<8x806xbf16>
    %9 = vector.extract_strided_slice %2 {offsets = [0, 126], sizes = [8, 806], strides = [1, 1]} : vector<8x1024xbf16> to vector<8x806xbf16>
    %10 = vector.extract_strided_slice %2 {offsets = [0, 127], sizes = [8, 806], strides = [1, 1]} : vector<8x1024xbf16> to vector<8x806xbf16>
    %11 = vector.extract_strided_slice %2 {offsets = [0, 128], sizes = [8, 806], strides = [1, 1]} : vector<8x1024xbf16> to vector<8x806xbf16>
    %12 = tpu.concatenate %3, %4, %5, %6, %7, %8, %9, %10, %11 in 0 : vector<8x806xbf16>, vector<8x806xbf16>, vector<8x806xbf16>, vector<8x806xbf16>, vector<8x806xbf16>, vector<8x806xbf16>, vector<8x806xbf16>, vector<8x806xbf16>, vector<8x806xbf16> -> vector<72x806xbf16>
    %c0_2 = arith.constant 0 : index
    %c0_3 = arith.constant 0 : index
    %13 = vector.load %arg2[%c0_2, %c0_3] : memref<8x72xbf16, #tpu.memory_space<vmem>>, vector<8x72xbf16>
    %cst = arith.constant dense<0.000000e+00> : vector<8x806xf32>
    %14 = tpu.matmul %13, %12, %cst {dimension_numbers = #tpu.dot_dimension_numbers<[1], [0], [0], [1], [0, 0, 1, 1], [], []>} : vector<8x72xbf16>, vector<72x806xbf16>, vector<8x806xf32> -> vector<8x806xf32>
    %c0_4 = arith.constant 0 : index
    %c0_5 = arith.constant 0 : index
    %15 = vector.load %arg4[%c0_4, %c0_5] : memref<8x1xf32, #tpu.memory_space<vmem>>, vector<8x1xf32>
    %16 = vector.broadcast %15 : vector<8x1xf32> to vector<8x806xf32>
    %17 = arith.mulf %14, %16 : vector<8x806xf32>
    %c0_6 = arith.constant 0 : index
    %c0_7 = arith.constant 0 : index
    %18 = vector.load %arg5[%c0_6, %c0_7] : memref<8x1xf32, #tpu.memory_space<vmem>>, vector<8x1xf32>
    %19 = vector.broadcast %18 : vector<8x1xf32> to vector<8x806xf32>
    %20 = arith.addf %17, %19 : vector<8x806xf32>
    %cst_8 = arith.constant 0.000000e+00 : f32
    %21 = vector.broadcast %cst_8 : f32 to vector<8x806xf32>
    %22 = arith.maximumf %20, %21 : vector<8x806xf32>
    %c0_9 = arith.constant 0 : index
    %c0_10 = arith.constant 0 : index
    %23 = vector.load %arg8[%c0_9, %c0_10] : memref<1x806xf32, #tpu.memory_space<vmem>>, vector<1x806xf32>
    %24 = vector.broadcast %23 : vector<1x806xf32> to vector<8x806xf32>
    %25 = arith.mulf %22, %24 : vector<8x806xf32>
    %26 = arith.truncf %25 : vector<8x806xf32> to vector<8x806xbf16>
    %27 = vector.extract_strided_slice %26 {offsets = [0, 0], sizes = [8, 768], strides = [1, 1]} : vector<8x806xbf16> to vector<8x768xbf16>
    %28 = vector.extract_strided_slice %26 {offsets = [0, 1], sizes = [8, 768], strides = [1, 1]} : vector<8x806xbf16> to vector<8x768xbf16>
    %29 = vector.extract_strided_slice %26 {offsets = [0, 2], sizes = [8, 768], strides = [1, 1]} : vector<8x806xbf16> to vector<8x768xbf16>
    %30 = vector.extract_strided_slice %26 {offsets = [0, 18], sizes = [8, 768], strides = [1, 1]} : vector<8x806xbf16> to vector<8x768xbf16>
    %31 = vector.extract_strided_slice %26 {offsets = [0, 19], sizes = [8, 768], strides = [1, 1]} : vector<8x806xbf16> to vector<8x768xbf16>
    %32 = vector.extract_strided_slice %26 {offsets = [0, 20], sizes = [8, 768], strides = [1, 1]} : vector<8x806xbf16> to vector<8x768xbf16>
    %33 = vector.extract_strided_slice %26 {offsets = [0, 36], sizes = [8, 768], strides = [1, 1]} : vector<8x806xbf16> to vector<8x768xbf16>
    %34 = vector.extract_strided_slice %26 {offsets = [0, 37], sizes = [8, 768], strides = [1, 1]} : vector<8x806xbf16> to vector<8x768xbf16>
    %35 = vector.extract_strided_slice %26 {offsets = [0, 38], sizes = [8, 768], strides = [1, 1]} : vector<8x806xbf16> to vector<8x768xbf16>
    %36 = tpu.concatenate %27, %28, %29, %30, %31, %32, %33, %34, %35 in 0 : vector<8x768xbf16>, vector<8x768xbf16>, vector<8x768xbf16>, vector<8x768xbf16>, vector<8x768xbf16>, vector<8x768xbf16>, vector<8x768xbf16>, vector<8x768xbf16>, vector<8x768xbf16> -> vector<72x768xbf16>
    %c0_11 = arith.constant 0 : index
    %c0_12 = arith.constant 0 : index
    %37 = vector.load %arg3[%c0_11, %c0_12] : memref<8x72xbf16, #tpu.memory_space<vmem>>, vector<8x72xbf16>
    %cst_13 = arith.constant dense<0.000000e+00> : vector<8x768xf32>
    %38 = tpu.matmul %37, %36, %cst_13 {dimension_numbers = #tpu.dot_dimension_numbers<[1], [0], [0], [1], [0, 0, 1, 1], [], []>} : vector<8x72xbf16>, vector<72x768xbf16>, vector<8x768xf32> -> vector<8x768xf32>
    %39 = vector.extract_strided_slice %1 {offsets = [0, 128], sizes = [8, 768], strides = [1, 1]} : vector<8x1024xf32> to vector<8x768xf32>
    %c0_14 = arith.constant 0 : index
    %c0_15 = arith.constant 0 : index
    %40 = vector.load %arg6[%c0_14, %c0_15] : memref<8x1xf32, #tpu.memory_space<vmem>>, vector<8x1xf32>
    %41 = vector.broadcast %40 : vector<8x1xf32> to vector<8x768xf32>
    %42 = arith.mulf %38, %41 : vector<8x768xf32>
    %c0_16 = arith.constant 0 : index
    %c0_17 = arith.constant 0 : index
    %43 = vector.load %arg7[%c0_16, %c0_17] : memref<8x1xf32, #tpu.memory_space<vmem>>, vector<8x1xf32>
    %44 = vector.broadcast %43 : vector<8x1xf32> to vector<8x768xf32>
    %45 = arith.addf %42, %44 : vector<8x768xf32>
    %46 = arith.addf %45, %39 : vector<8x768xf32>
    %cst_18 = arith.constant 0.000000e+00 : f32
    %47 = vector.broadcast %cst_18 : f32 to vector<8x768xf32>
    %48 = arith.maximumf %46, %47 : vector<8x768xf32>
    %c0_19 = arith.constant 0 : index
    %c0_20 = arith.constant 0 : index
    %c0_21 = arith.constant 0 : index
    %49 = vector.load %arg9[%c0_19, %c0_20, %c0_21] : memref<1x8x768xf32, #tpu.memory_space<vmem>>, vector<1x8x768xf32>
    %50 = vector.shape_cast %49 : vector<1x8x768xf32> to vector<8x768xf32>
    %51 = vector.shape_cast %48 : vector<8x768xf32> to vector<1x8x768xf32>
    tpu.vector_store %arg9[%c0_19, %c0_20, %c0_21], %51 {strides = array<i32>} : memref<1x8x768xf32, #tpu.memory_space<vmem>>, vector<1x8x768xf32>,
    return
  }
  func.func @transform_0(%arg0: i32) -> (i32, i32, i32) {
    %c0_i32 = arith.constant 0 : i32
    %c0_i32_0 = arith.constant 0 : i32
    %c0_i32_1 = arith.constant 0 : i32
    return %arg0, %c0_i32, %c0_i32_0 : i32, i32, i32
  }
  func.func @transform_1(%arg0: i32) -> (i32, i32) {
    %c0_i32 = arith.constant 0 : i32
    %c0_i32_0 = arith.constant 0 : i32
    %c0_i32_1 = arith.constant 0 : i32
    return %c0_i32, %c0_i32_0 : i32, i32
  }
  func.func @transform_2(%arg0: i32) -> (i32, i32) {
    %c0_i32 = arith.constant 0 : i32
    %c0_i32_0 = arith.constant 0 : i32
    %c0_i32_1 = arith.constant 0 : i32
    return %c0_i32, %c0_i32_0 : i32, i32
  }
  func.func @transform_3(%arg0: i32) -> (i32, i32) {
    %c0_i32 = arith.constant 0 : i32
    %c0_i32_0 = arith.constant 0 : i32
    %c0_i32_1 = arith.constant 0 : i32
    return %c0_i32, %c0_i32_0 : i32, i32
  }
  func.func @transform_4(%arg0: i32) -> (i32, i32) {
    %c0_i32 = arith.constant 0 : i32
    %c0_i32_0 = arith.constant 0 : i32
    %c0_i32_1 = arith.constant 0 : i32
    return %c0_i32, %c0_i32_0 : i32, i32
  }
  func.func @transform_5(%arg0: i32) -> (i32, i32) {
    %c0_i32 = arith.constant 0 : i32
    %c0_i32_0 = arith.constant 0 : i32
    %c0_i32_1 = arith.constant 0 : i32
    return %c0_i32, %c0_i32_0 : i32, i32
  }
  func.func @transform_6(%arg0: i32) -> (i32, i32) {
    %c0_i32 = arith.constant 0 : i32
    %c0_i32_0 = arith.constant 0 : i32
    %c0_i32_1 = arith.constant 0 : i32
    return %c0_i32, %c0_i32_0 : i32, i32
  }
  func.func @transform_7(%arg0: i32) -> (i32, i32) {
    %c0_i32 = arith.constant 0 : i32
    %c0_i32_0 = arith.constant 0 : i32
    %c0_i32_1 = arith.constant 0 : i32
    return %c0_i32, %c0_i32_0 : i32, i32
  }
  func.func @transform_8(%arg0: i32) -> (i32, i32, i32) {
    %c0_i32 = arith.constant 0 : i32
    %c0_i32_0 = arith.constant 0 : i32
    %c0_i32_1 = arith.constant 0 : i32
    return %arg0, %c0_i32, %c0_i32_0 : i32, i32, i32
  }
}

</mosaic_0001>

<bundles_post_ra>
// kernel: tile.7
= control target key start
LH: loop header
LB: loop body
LE: loop exit
PB: predicated region body
PF: predicated region fallthrough
CT: control target
= control target key end

     0   :  { %vm27_vm0 = vcmask 490496   ;;  %vm17_vm1 = vcmask 556032   ;;  %s38_s12 = smov 3  ;;  %s53_s13 = smov 68   ;;  %vm31_vm2 = vcmask 64512   ;;  %vm34_vm3 = vcmask 1048096   ;;  %s90_s0 = inlined_call_operand.vmem [shape: f32[2,324], index: 0, kind: input, shape index: {}]   ;;  %s91_s1 = inlined_call_operand.vmem [shape: f32[648], index: 1, kind: output, shape index: {}]  }
   0x1   :  { %v46_v0 = vld [vmem:[%s90_s0 + $0x4] sm:$0x3]  ;;  %v47_v1 = vld [vmem:[%s90_s0 + $0x2] sm:$0x3]  ;;  %v13_v2 = vld [vmem:[%s90_s0] sm:$0x3] }
   0x2   :  { %8 = vst [vmem:[#allocation0 + $0x10] sm:$0x3] %v46_v0  ;;  %12 = vst [vmem:[#allocation0 + $0x8] sm:$0x3] %v47_v1  ;;  %s20_s0 = smov 3 }
   0x3   :  { %14 = vst [vmem:[#allocation0] sm:$0x3] %v13_v2 }
   0x9   :  { %v24_v3 = vld [vmem:[#allocation0 + $0x11] sm:$0x1]   ;;  %v16_v7 = vld [vmem:[#allocation0 + $0x10] sm:$0x1]  }
   0xa   :  { %v26_v4 = vld [vmem:[#allocation0 + $0x1] ss:$8 sm:$0x7]   ;;  %v21_v6 = vld [vmem:[#allocation0] ss:$8 sm:%s20_s0]  }
   0xb   :  { %v28_v5 = vsel %vm27_vm0, %v26_v4, %v24_v3  ;;  %22 = vst [vmem:[%s91_s1] sm:$0x3] %v21_v6   ;;  %48 = vst.msk [vmem:[%s91_s1 + $0x2] sm:$0x1] %vm17_vm1, %v16_v7   ;;  %v39_v8 = vld [vmem:[#allocation0 + $0x1] ss:$8 sm:%s38_s12]  }
   0xc   :  { %29 = vrot.lane.b32.xlu0 %v28_v5, %s53_s13 }
  0x10   :  { %40 = vrot.lane.b32.xlu0 %v39_v8, %s53_s13 }
  0x7e   :  { %v30_v9 = vpop.permute.xlu0 %29  }
  0x7f   :  { %49 = vst.msk [vmem:[%s91_s1 + $0x5] sm:$0x1] %vm31_vm2, %v30_v9  }
  0x80   :  { %50 = vst.msk [vmem:[%s91_s1 + $0x2] sm:$0x7] %vm34_vm3, %v30_v9  }
  0x82   :  { %v41_v10 = vpop.permute.xlu0 %40  }
  0x83   :  { %51 = vst.msk [vmem:[%s91_s1 + $0x3] sm:$0x3] %vm17_vm1, %v41_v10  }

// kernel: tile.6
= control target key start
LH: loop header
LB: loop body
LE: loop exit
PB: predicated region body
PF: predicated region fallthrough
CT: control target
= control target key end

     0   :  { %s46_s0 = inlined_call_operand.vmem [shape: f32[324], index: 0, kind: input, shape index: {}]   ;;  %s47_s1 = inlined_call_operand.vmem [shape: f32[2,324], index: 1, kind: output, shape index: {}]  }
   0x1   :  { %v4_v0 = vld [vmem:[%s46_s0] ss:$0 sm:$0xff]  ;;  %v14_v1 = vld [vmem:[%s46_s0 + $0x1] ss:$0 sm:$0xff]  ;;  %v16_v2 = vld [vmem:[%s46_s0 + $0x2] ss:$0 sm:$0xff] }
   0x2   :  { %5 = vst [vmem:[%s47_s1] sm:$0x3] %v4_v0  ;;  %15 = vst [vmem:[%s47_s1 + $0x2] sm:$0x3] %v14_v1 }
   0x3   :  { %17 = vst [vmem:[%s47_s1 + $0x4] sm:$0x3] %v16_v2 }

// kernel: basic_block_forward.1
= control target key start
LH: loop header
LB: loop body
LE: loop exit
PB: predicated region body
PF: predicated region fallthrough
CT: control target
= control target key end

     0   :  { %s1693_s27 = smov 0   ;;  %s2378_s0 = inlined_call_operand.vmem [shape: f32[2,8,1024], index: 0, kind: input, shape index: {}]   ;;  %s2379_s1 = inlined_call_operand.vmem [shape: bf16[8,72], index: 1, kind: input, shape index: {}]   ;;  %s2380_s2 = inlined_call_operand.vmem [shape: bf16[8,72], index: 2, kind: input, shape index: {}]   ;;  %s2381_s3 = inlined_call_operand.vmem [shape: f32[8,1], index: 3, kind: input, shape index: {}]   ;;  %s2382_s4 = inlined_call_operand.vmem [shape: f32[8,1], index: 4, kind: input, shape index: {}]   ;;  %s2383_s5 = inlined_call_operand.vmem [shape: f32[8,1], index: 5, kind: input, shape index: {}]   ;;  %s2384_s6 = inlined_call_operand.vmem [shape: f32[8,1], index: 6, kind: input, shape index: {}]   ;;  %s2385_s7 = inlined_call_operand.vmem [shape: f32[1,806], index: 7, kind: input, shape index: {}]   ;;  %s2386_s8 = inlined_call_operand.vmem [shape: f32[2,8,768], index: 8, kind: output, shape index: {}]  }
   0x1 LB: > { %s1555_s28 = sadd.s32 4294967295, %s1634_s27   ;;  %p1559_p0 = scmp.ge.s32.totalorder %s1634_s27, 1  ;;  %s1634_s27 = sphi %s1693_s27, %s18_s27  }
   0x2   : > { %p262_p1 = scmp.lt.s32.totalorder %s1634_s27, 3 }
   0x4   : > { %p263_p2 = pnand %p1559_p0, %p262_p1 }
   0x5   : > { %p296_p3 = scmp.lt.s32.totalorder (!%p263_p2), %s1555_s28, 1  ;;  %s1636_s11 = smov (!%p263_p2), 127   ;;  %vm355_vm0 = vcmask (!%p263_p2), 1039360   ;;  %vm528_vm1 = vcmask (!%p263_p2), 1043456   ;;  %vm379_vm2 = vcmask (!%p263_p2), 1031168   ;;  %vm403_vm3 = vcmask (!%p263_p2), 900096  }
   0x6   : > { %266 = sbr.rel (%p263_p2) target bundleno = 1022 (0x3fe), region = 52  ;;  %s1637_s12 = smov (!%p263_p2), 126   ;;  %vm427_vm4 = vcmask (!%p263_p2), 891904   ;;  %vm451_vm5 = vcmask (!%p263_p2), 883712   ;;  %vm475_vm6 = vcmask (!%p263_p2), 752640   ;;  %vm499_vm7 = vcmask (!%p263_p2), 744448  }
   0x7   : > { %s1638_s13 = smov (!%p263_p2), 110   ;;  %s1639_s14 = smov (!%p263_p2), 109   ;;  %vm521_vm8 = vcmask (!%p263_p2), 736256   ;;  %vm712_vm9 = vcmask (!%p263_p2), 310272   ;;  %vm771_vm10 = vcmask (!%p263_p2), 588800   ;;  %vm1647_vm11 = vmmov (!%p263_p2), 0  }
   0x8   : > { %s1640_s15 = smov (!%p263_p2), 108   ;;  %s1641_s16 = smov (!%p263_p2), 92  }
   0x9   : > { %s1642_s17 = smov (!%p263_p2), 91   ;;  %s1643_s18 = smov (!%p263_p2), 90  }
   0xa   : > { %s1644_s19 = smov (!%p263_p2), 38  }
   0xd   : > { %s2388_s28 = smov (!%p296_p3, %s1555_s28), 1 }
   0xe   : > { %s1578_s29 = sshll.u32 %s2388_s28, 6 }
   0xf   : > { %s1707_s10 = scalar_lea.vmem %s2378_s0, %s1578_s29 }
  0x10   : > { %v310_v0 = vld [vmem:[%s1707_s10 + $0x18] sm:$0xff]  ;;  %v308_v1 = vld [vmem:[%s1707_s10 + $0x8] sm:$0xff]  ;;  %v309_v2 = vld [vmem:[%s1707_s10 + $0x10] sm:$0xff] }
  0x11   : > { %v1712_v3 = vpack.c.bf16 %v310_v0, %v310_v0  ;;  %v1714_v4 = vpack.c.bf16 %v308_v1, %v308_v1  ;;  %v1716_v5 = vpack.c.bf16 %v309_v2, %v309_v2  ;;  %v307_v6 = vld [vmem:[%s1707_s10] sm:$0xff]  ;;  %v312_v9 = vld [vmem:[%s1707_s10 + $0x28] sm:$0xff]  ;;  %v313_v18 = vld [vmem:[%s1707_s10 + $0x30] sm:$0xff] }
  0x12   : > { %v1719_v7 = vpack.c.bf16 %v307_v6, %v307_v6  ;;  %v311_v8 = vld [vmem:[%s1707_s10 + $0x20] sm:$0xff]  ;;  %v1731_v15 = vpack.c.bf16 %v312_v9, %v312_v9  ;;  %v1798_v19 = vpack.c.bf16 %v313_v18, %v313_v18  ;;  %v314_v20 = vld [vmem:[%s1707_s10 + $0x38] sm:$0xff] }
  0x13   : > { %v334_v10 = vrot.slane %v1712_v3, 4  ;;  %v332_v11 = vrot.slane %v1714_v4, 4  ;;  %v333_v12 = vrot.slane %v1716_v5, 4  ;;  %v1729_v14 = vpack.c.bf16 %v311_v8, %v311_v8 }
  0x14   : > { %v331_v13 = vrot.slane %v1719_v7, 4  ;;  %v336_v17 = vrot.slane %v1731_v15, 4  ;;  %v337_v21 = vrot.slane %v1798_v19, 4  ;;  %v322_v22 = vpack.c.bf16 %v314_v20, %v314_v20 }
  0x15   : > { %345 = vrot.lane.b32.xlu1 %v334_v10, %s1636_s11  ;;  %341 = vrot.lane.b32.xlu0 %v332_v11, %s1636_s11  ;;  %v335_v16 = vrot.slane %v1729_v14, 4 }
  0x16   : > { %v338_v23 = vrot.slane %v322_v22, 4 }
  0x19   : > { %343 = vrot.lane.b32.xlu0 %v333_v12, %s1636_s11  ;;  %339 = vrot.lane.b32.xlu1 %v331_v13, %s1636_s11 }
  0x1d   : > { %347 = vrot.lane.b32.xlu0 %v335_v16, %s1636_s11  ;;  %349 = vrot.lane.b32.xlu1 %v336_v17, %s1636_s11 }
  0x21   : > { %365 = vrot.lane.b32.xlu0 %v1714_v4, %s1637_s12  ;;  %367 = vrot.lane.b32.xlu1 %v1716_v5, %s1637_s12 }
  0x25   : > { %369 = vrot.lane.b32.xlu0 %v1712_v3, %s1637_s12  ;;  %389 = vrot.lane.b32.xlu1 %v332_v11, %s1638_s13 }
  0x29   : > { %391 = vrot.lane.b32.xlu0 %v333_v12, %s1638_s13  ;;  %393 = vrot.lane.b32.xlu1 %v334_v10, %s1638_s13 }
  0x2d   : > { %363 = vrot.lane.b32.xlu0 %v1719_v7, %s1637_s12  ;;  %371 = vrot.lane.b32.xlu1 %v1729_v14, %s1637_s12 }
  0x31   : > { %373 = vrot.lane.b32.xlu0 %v1731_v15, %s1637_s12  ;;  %387 = vrot.lane.b32.xlu1 %v331_v13, %s1638_s13 }
  0x35   : > { %395 = vrot.lane.b32.xlu0 %v335_v16, %s1638_s13  ;;  %397 = vrot.lane.b32.xlu1 %v336_v17, %s1638_s13 }
  0x39   : > { %413 = vrot.lane.b32.xlu0 %v1714_v4, %s1639_s14  ;;  %415 = vrot.lane.b32.xlu1 %v1716_v5, %s1639_s14 }
  0x3d   : > { %417 = vrot.lane.b32.xlu0 %v1712_v3, %s1639_s14  ;;  %437 = vrot.lane.b32.xlu1 %v332_v11, %s1640_s15 }
  0x41   : > { %439 = vrot.lane.b32.xlu0 %v333_v12, %s1640_s15  ;;  %441 = vrot.lane.b32.xlu1 %v334_v10, %s1640_s15 }
  0x45   : > { %411 = vrot.lane.b32.xlu0 %v1719_v7, %s1639_s14  ;;  %419 = vrot.lane.b32.xlu1 %v1729_v14, %s1639_s14 }
  0x49   : > { %421 = vrot.lane.b32.xlu0 %v1731_v15, %s1639_s14  ;;  %435 = vrot.lane.b32.xlu1 %v331_v13, %s1640_s15 }
  0x4d   : > { %443 = vrot.lane.b32.xlu0 %v335_v16, %s1640_s15  ;;  %445 = vrot.lane.b32.xlu1 %v336_v17, %s1640_s15 }
  0x51   : > { %461 = vrot.lane.b32.xlu0 %v1714_v4, %s1641_s16  ;;  %463 = vrot.lane.b32.xlu1 %v1716_v5, %s1641_s16 }
  0x55   : > { %465 = vrot.lane.b32.xlu0 %v1712_v3, %s1641_s16  ;;  %485 = vrot.lane.b32.xlu1 %v332_v11, %s1642_s17 }
  0x59   : > { %487 = vrot.lane.b32.xlu0 %v333_v12, %s1642_s17  ;;  %489 = vrot.lane.b32.xlu1 %v334_v10, %s1642_s17 }
  0x5d   : > { %459 = vrot.lane.b32.xlu0 %v1719_v7, %s1641_s16  ;;  %467 = vrot.lane.b32.xlu1 %v1729_v14, %s1641_s16 }
  0x61   : > { %469 = vrot.lane.b32.xlu0 %v1731_v15, %s1641_s16  ;;  %483 = vrot.lane.b32.xlu1 %v331_v13, %s1642_s17 }
  0x65   : > { %491 = vrot.lane.b32.xlu0 %v335_v16, %s1642_s17  ;;  %493 = vrot.lane.b32.xlu1 %v336_v17, %s1642_s17 }
  0x69   : > { %507 = vrot.lane.b32.xlu0 %v1714_v4, %s1643_s18  ;;  %509 = vrot.lane.b32.xlu1 %v1716_v5, %s1643_s18 }
  0x6d   : > { %511 = vrot.lane.b32.xlu0 %v1712_v3, %s1643_s18  ;;  %513 = vrot.lane.b32.xlu1 %v1729_v14, %s1643_s18 }
  0x71   : > { %515 = vrot.lane.b32.xlu0 %v1731_v15, %s1643_s18  ;;  %351 = vrot.lane.b32.xlu1 %v337_v21, %s1636_s11 }
  0x75   : > { %353 = vrot.lane.b32.xlu0 %v338_v23, %s1636_s11  ;;  %375 = vrot.lane.b32.xlu1 %v1798_v19, %s1637_s12 }
  0x79   : > { %377 = vrot.lane.b32.xlu0 %v322_v22, %s1637_s12  ;;  %399 = vrot.lane.b32.xlu1 %v337_v21, %s1638_s13 }
  0x7d   : > { %401 = vrot.lane.b32.xlu0 %v338_v23, %s1638_s13  ;;  %423 = vrot.lane.b32.xlu1 %v1798_v19, %s1639_s14 }
  0x81   : > { %425 = vrot.lane.b32.xlu0 %v322_v22, %s1639_s14  ;;  %447 = vrot.lane.b32.xlu1 %v337_v21, %s1640_s15 }
  0x85   : > { %449 = vrot.lane.b32.xlu0 %v338_v23, %s1640_s15  ;;  %471 = vrot.lane.b32.xlu1 %v1798_v19, %s1641_s16 }
  0x87   : > { %v346_v24 = vpop.permute.xlu1 %345  ;;  %v342_v25 = vpop.permute.xlu0 %341 }
  0x89   : > { %473 = vrot.lane.b32.xlu0 %v322_v22, %s1641_s16  ;;  %495 = vrot.lane.b32.xlu1 %v337_v21, %s1642_s17 }
  0x8b   : > { %v344_v26 = vpop.permute.xlu0 %343  ;;  %v340_v27 = vpop.permute.xlu1 %339 }
  0x8c   : > { %v357_v28 = vsel %vm355_vm0, %v342_v25, %v344_v26  ;;  %v358_v32 = vsel %vm355_vm0, %v344_v26, %v346_v24  ;;  %v356_v33 = vsel %vm355_vm0, %v340_v27, %v342_v25 }
  0x8d   : > { %497 = vrot.lane.b32.xlu0 %v338_v23, %s1642_s17  ;;  %517 = vrot.lane.b32.xlu1 %v1798_v19, %s1643_s18  ;;  %v534_v31 = vsel %vm528_vm1, %v1714_v4, %v357_v28  ;;  %v537_v36 = vsel %vm528_vm1, %v1716_v5, %v358_v32  ;;  %v531_v37 = vsel %vm528_vm1, %v1719_v7, %v356_v33 }
  0x8f   : > { %v348_v29 = vpop.permute.xlu0 %347  ;;  %v1828_v30 = vpop.permute.xlu1 %349 }
  0x90   : > { %v359_v38 = vsel %vm355_vm0, %v346_v24, %v348_v29  ;;  %v360_v39 = vsel %vm355_vm0, %v348_v29, %v1828_v30 }
  0x91   : > { %519 = vrot.lane.b32.xlu0 %v322_v22, %s1643_s18  ;;  %644 = vrot.lane.b32.xlu1 %v534_v31, %s1644_s19  ;;  %v540_v42 = vsel %vm528_vm1, %v1712_v3, %v359_v38  ;;  %v543_v43 = vsel %vm528_vm1, %v1729_v14, %v360_v39 }
  0x93   : > { %v366_v34 = vpop.permute.xlu0 %365  ;;  %v368_v35 = vpop.permute.xlu1 %367 }
  0x94   : > { %v381_v46 = vsel %vm379_vm2, %v366_v34, %v368_v35 }
  0x95   : > { %646 = vrot.lane.b32.xlu0 %v537_v36, %s1644_s19  ;;  %642 = vrot.lane.b32.xlu1 %v531_v37, %s1644_s19 }
  0x97   : > { %v370_v40 = vpop.permute.xlu0 %369  ;;  %v390_v41 = vpop.permute.xlu1 %389 }
  0x98   : > { %v382_v47 = vsel %vm379_vm2, %v368_v35, %v370_v40 }
  0x99   : > { %648 = vrot.lane.b32.xlu0 %v540_v42, %s1644_s19  ;;  %650 = vrot.lane.b32.xlu1 %v543_v43, %s1644_s19 }
  0x9b   : > { %v392_v44 = vpop.permute.xlu0 %391  ;;  %v394_v45 = vpop.permute.xlu1 %393 }
  0x9c   : > { %v405_v48 = vsel %vm403_vm3, %v390_v41, %v392_v44  ;;  %v406_v49 = vsel %vm403_vm3, %v392_v44, %v394_v45 }
  0x9d   : > { %v555_v50 = vsel %vm528_vm1, %v381_v46, %v405_v48  ;;  %v558_v51 = vsel %vm528_vm1, %v382_v47, %v406_v49 }
  0x9e   : > { %658 = vrot.lane.b32.xlu0 %v555_v50, %s1644_s19  ;;  %660 = vrot.lane.b32.xlu1 %v558_v51, %s1644_s19 }
  0x9f   : > { %v364_v52 = vpop.permute.xlu0 %363  ;;  %v372_v53 = vpop.permute.xlu1 %371 }
  0xa0   : > { %v380_v56 = vsel %vm379_vm2, %v364_v52, %v366_v34  ;;  %v383_v61 = vsel %vm379_vm2, %v370_v40, %v372_v53 }
  0xa3   : > { %v1859_v54 = vpop.permute.xlu0 %373  ;;  %v388_v55 = vpop.permute.xlu1 %387 }
  0xa4   : > { %v404_v57 = vsel %vm403_vm3, %v388_v55, %v390_v41  ;;  %v384_v62 = vsel %vm379_vm2, %v372_v53, %v1859_v54 }
  0xa5   : > { %v552_v58 = vsel %vm528_vm1, %v380_v56, %v404_v57 }
  0xa6   : > { %656 = vrot.lane.b32.xlu0 %v552_v58, %s1644_s19 }
  0xa7   : > { %v396_v59 = vpop.permute.xlu0 %395  ;;  %v1865_v60 = vpop.permute.xlu1 %397 }
  0xa8   : > { %v407_v63 = vsel %vm403_vm3, %v394_v45, %v396_v59  ;;  %v408_v0 = vsel %vm403_vm3, %v396_v59, %v1865_v60 }
  0xa9   : > { %v561_v1 = vsel %vm528_vm1, %v383_v61, %v407_v63  ;;  %v564_v2 = vsel %vm528_vm1, %v384_v62, %v408_v0  ;;  %v1645_v62 = vmov 0  }
  0xaa   : > { %662 = vrot.lane.b32.xlu1 %v561_v1, %s1644_s19  ;;  %664 = vrot.lane.b32.xlu0 %v564_v2, %s1644_s19 }
  0xab   : > { %v414_v3 = vpop.permute.xlu0 %413  ;;  %v416_v4 = vpop.permute.xlu1 %415  ;;  %828 = vmatprep.mubr.bf16.mxu0 %v1645_v62  ;;  %869 = vmatprep.mubr.bf16.mxu1 %v1645_v62 }
  0xac   : > { %v429_v9 = vsel %vm427_vm4, %v414_v3, %v416_v4  ;;  %1620 = vset.pattern.permute.xlu0 %v1645_v62  ;;  %1621 = vset.pattern.permute.xlu1 %v1645_v62 }
  0xaf   : > { %v418_v5 = vpop.permute.xlu0 %417  ;;  %v438_v6 = vpop.permute.xlu1 %437 }
  0xb0   : > { %v430_v10 = vsel %vm427_vm4, %v416_v4, %v418_v5 }
  0xb3   : > { %v440_v7 = vpop.permute.xlu0 %439  ;;  %v442_v8 = vpop.permute.xlu1 %441 }
  0xb4   : > { %v453_v11 = vsel %vm451_vm5, %v438_v6, %v440_v7  ;;  %v454_v12 = vsel %vm451_vm5, %v440_v7, %v442_v8 }
  0xb5   : > { %v576_v13 = vsel %vm528_vm1, %v429_v9, %v453_v11  ;;  %v579_v14 = vsel %vm528_vm1, %v430_v10, %v454_v12 }
  0xb6   : > { %672 = vrot.lane.b32.xlu1 %v576_v13, %s1644_s19  ;;  %674 = vrot.lane.b32.xlu0 %v579_v14, %s1644_s19 }
  0xb7   : > { %v412_v16 = vpop.permute.xlu0 %411  ;;  %v420_v17 = vpop.permute.xlu1 %419 }
  0xb8   : > { %v428_v21 = vsel %vm427_vm4, %v412_v16, %v414_v3  ;;  %v431_v26 = vsel %vm427_vm4, %v418_v5, %v420_v17 }
  0xbb   : > { %v1885_v18 = vpop.permute.xlu0 %421  ;;  %v436_v20 = vpop.permute.xlu1 %435 }
  0xbc   : > { %v452_v22 = vsel %vm451_vm5, %v436_v20, %v438_v6  ;;  %v432_v27 = vsel %vm427_vm4, %v420_v17, %v1885_v18 }
  0xbd   : > { %v573_v23 = vsel %vm528_vm1, %v428_v21, %v452_v22 }
  0xbe   : > { %670 = vrot.lane.b32.xlu1 %v573_v23, %s1644_s19 }
  0xbf   : > { %v444_v24 = vpop.permute.xlu0 %443  ;;  %v1891_v25 = vpop.permute.xlu1 %445 }
  0xc0   : > { %v455_v28 = vsel %vm451_vm5, %v442_v8, %v444_v24  ;;  %v456_v29 = vsel %vm451_vm5, %v444_v24, %v1891_v25 }
  0xc1   : > { %v582_v31 = vsel %vm528_vm1, %v431_v26, %v455_v28  ;;  %v585_v32 = vsel %vm528_vm1, %v432_v27, %v456_v29 }
  0xc2   : > { %676 = vrot.lane.b32.xlu0 %v582_v31, %s1644_s19  ;;  %678 = vrot.lane.b32.xlu1 %v585_v32, %s1644_s19 }
  0xc3   : > { %v462_v33 = vpop.permute.xlu0 %461  ;;  %v464_v34 = vpop.permute.xlu1 %463 }
  0xc4   : > { %v477_v39 = vsel %vm475_vm6, %v462_v33, %v464_v34 }
  0xc7   : > { %v466_v35 = vpop.permute.xlu0 %465  ;;  %v486_v36 = vpop.permute.xlu1 %485 }
  0xc8   : > { %v478_v40 = vsel %vm475_vm6, %v464_v34, %v466_v35 }
  0xcb   : > { %v488_v37 = vpop.permute.xlu0 %487  ;;  %v490_v38 = vpop.permute.xlu1 %489 }
  0xcc   : > { %v501_v41 = vsel %vm499_vm7, %v486_v36, %v488_v37  ;;  %v502_v42 = vsel %vm499_vm7, %v488_v37, %v490_v38 }
  0xcd   : > { %v597_v43 = vsel %vm528_vm1, %v477_v39, %v501_v41  ;;  %v600_v44 = vsel %vm528_vm1, %v478_v40, %v502_v42 }
  0xce   : > { %686 = vrot.lane.b32.xlu0 %v597_v43, %s1644_s19  ;;  %688 = vrot.lane.b32.xlu1 %v600_v44, %s1644_s19 }
  0xcf   : > { %v460_v45 = vpop.permute.xlu0 %459  ;;  %v468_v46 = vpop.permute.xlu1 %467 }
  0xd0   : > { %v476_v49 = vsel %vm475_vm6, %v460_v45, %v462_v33  ;;  %v479_v52 = vsel %vm475_vm6, %v466_v35, %v468_v46 }
  0xd3   : > { %v1911_v47 = vpop.permute.xlu0 %469  ;;  %v484_v48 = vpop.permute.xlu1 %483 }
  0xd4   : > { %v500_v50 = vsel %vm499_vm7, %v484_v48, %v486_v36  ;;  %v480_v56 = vsel %vm475_vm6, %v468_v46, %v1911_v47  ;;  %v959_v46 = vld [vmem:[%s2381_s3] sm:$0xff] }
  0xd5   : > { %v594_v51 = vsel %vm528_vm1, %v476_v49, %v500_v50  ;;  %v972_v50 = vld [vmem:[%s2382_s4] sm:$0xff] }
  0xd6   : > { %684 = vrot.lane.b32.xlu0 %v594_v51, %s1644_s19 }
  0xd7   : > { %v492_v53 = vpop.permute.xlu0 %491  ;;  %v1918_v55 = vpop.permute.xlu1 %493 }
  0xd8   : > { %v503_v57 = vsel %vm499_vm7, %v490_v38, %v492_v53  ;;  %v504_v58 = vsel %vm499_vm7, %v492_v53, %v1918_v55 }
  0xd9   : > { %v603_v59 = vsel %vm528_vm1, %v479_v52, %v503_v57  ;;  %v606_v61 = vsel %vm528_vm1, %v480_v56, %v504_v58 }
  0xda   : > { %690 = vrot.lane.b32.xlu1 %v603_v59, %s1644_s19  ;;  %692 = vrot.lane.b32.xlu0 %v606_v61, %s1644_s19 }
  0xdb   : > { %v508_v63 = vpop.permute.xlu0 %507  ;;  %v510_v0 = vpop.permute.xlu1 %509 }
  0xdc   : > { %v522_v1 = vsel %vm521_vm8, %v508_v63, %v510_v0 }
  0xde   : > { %698 = vrot.lane.b32.xlu1 %v508_v63, %s1644_s19  ;;  %700 = vrot.lane.b32.xlu0 %v522_v1, %s1644_s19 }
  0xdf   : > { %v512_v2 = vpop.permute.xlu0 %511  ;;  %v514_v3 = vpop.permute.xlu1 %513 }
  0xe0   : > { %v523_v4 = vsel %vm521_vm8, %v510_v0, %v512_v2  ;;  %v524_v5 = vsel %vm521_vm8, %v512_v2, %v514_v3 }
  0xe2   : > { %702 = vrot.lane.b32.xlu1 %v523_v4, %s1644_s19  ;;  %704 = vrot.lane.b32.xlu0 %v524_v5, %s1644_s19 }
  0xe3   : > { %v516_v6 = vpop.permute.xlu0 %515  ;;  %v352_v7 = vpop.permute.xlu1 %351 }
  0xe4   : > { %v361_v8 = vsel %vm355_vm0, %v1828_v30, %v352_v7  ;;  %v525_v9 = vsel %vm521_vm8, %v514_v3, %v516_v6 }
  0xe5   : > { %v546_v10 = vsel %vm528_vm1, %v1731_v15, %v361_v8 }
  0xe6   : > { %706 = vrot.lane.b32.xlu1 %v525_v9, %s1644_s19  ;;  %652 = vrot.lane.b32.xlu0 %v546_v10, %s1644_s19 }
  0xe7   : > { %v354_v11 = vpop.permute.xlu0 %353  ;;  %v376_v12 = vpop.permute.xlu1 %375 }
  0xe8   : > { %v362_v13 = vsel %vm355_vm0, %v352_v7, %v354_v11  ;;  %v385_v17 = vsel %vm379_vm2, %v1859_v54, %v376_v12 }
  0xe9   : > { %v549_v14 = vsel %vm528_vm1, %v1798_v19, %v362_v13 }
  0xea   : > { %654 = vrot.lane.b32.xlu1 %v549_v14, %s1644_s19 }
  0xeb   : > { %v378_v16 = vpop.permute.xlu0 %377  ;;  %v400_v30 = vpop.permute.xlu1 %399 }
  0xec   : > { %v409_v15 = vsel %vm403_vm3, %v1865_v60, %v400_v30  ;;  %v386_v21 = vsel %vm379_vm2, %v376_v12, %v378_v16 }
  0xed   : > { %v567_v20 = vsel %vm528_vm1, %v385_v17, %v409_v15 }
  0xee   : > { %666 = vrot.lane.b32.xlu0 %v567_v20, %s1644_s19 }
  0xef   : > { %v402_v22 = vpop.permute.xlu0 %401  ;;  %v424_v23 = vpop.permute.xlu1 %423 }
  0xf0   : > { %v410_v19 = vsel %vm403_vm3, %v400_v30, %v402_v22  ;;  %v433_v54 = vsel %vm427_vm4, %v1885_v18, %v424_v23 }
  0xf1   : > { %v570_v24 = vsel %vm528_vm1, %v386_v21, %v410_v19 }
  0xf2   : > { %668 = vrot.lane.b32.xlu1 %v570_v24, %s1644_s19 }
  0xf3   : > { %v426_v26 = vpop.permute.xlu0 %425  ;;  %v448_v27 = vpop.permute.xlu1 %447 }
  0xf4   : > { %v457_v60 = vsel %vm451_vm5, %v1891_v25, %v448_v27  ;;  %v434_v29 = vsel %vm427_vm4, %v424_v23, %v426_v26 }
  0xf5   : > { %v588_v28 = vsel %vm528_vm1, %v433_v54, %v457_v60 }
  0xf6   : > { %680 = vrot.lane.b32.xlu0 %v588_v28, %s1644_s19 }
  0xf7   : > { %v450_v31 = vpop.permute.xlu0 %449  ;;  %v472_v32 = vpop.permute.xlu1 %471 }
  0xf8   : > { %v458_v33 = vsel %vm451_vm5, %v448_v27, %v450_v31  ;;  %v481_v18 = vsel %vm475_vm6, %v1911_v47, %v472_v32  ;;  %v613_v31 = vld [vmem:[%s2379_s1] sm:$0xf] }
  0xf9   : > { %v591_v34 = vsel %vm528_vm1, %v434_v29, %v458_v33 }
  0xfa   : > { %682 = vrot.lane.b32.xlu1 %v591_v34, %s1644_s19 }
  0xfb   : > { %v474_v35 = vpop.permute.xlu0 %473  ;;  %v496_v36 = vpop.permute.xlu1 %495 }
  0xfc   : > { %v505_v25 = vsel %vm499_vm7, %v1918_v55, %v496_v36  ;;  %v482_v38 = vsel %vm475_vm6, %v472_v32, %v474_v35 }
  0xfd   : > { %v609_v37 = vsel %vm528_vm1, %v481_v18, %v505_v25  ;;  %v1646_v18 = vmov 0.0  }
  0xfe   : > { %694 = vrot.lane.b32.xlu0 %v609_v37, %s1644_s19 }
  0xff   : > { %v498_v39 = vpop.permute.xlu0 %497  ;;  %v518_v40 = vpop.permute.xlu1 %517 }
 0x100   : > { %v506_v41 = vsel %vm499_vm7, %v496_v36, %v498_v39  ;;  %v526_v42 = vsel %vm521_vm8, %v516_v6, %v518_v40 }
 0x101   : > { %v612_v43 = vsel %vm528_vm1, %v482_v38, %v506_v41 }
 0x102   : > { %696 = vrot.lane.b32.xlu1 %v612_v43, %s1644_s19  ;;  %708 = vrot.lane.b32.xlu0 %v526_v42, %s1644_s19 }
 0x103   : > { %v520_v44 = vpop.permute.xlu0 %519  ;;  %v645_v45 = vpop.permute.xlu1 %644 }
 0x104   : > { %v527_v47 = vsel %vm521_vm8, %v518_v40, %v520_v44 }
 0x106   : > { %710 = vrot.lane.b32.xlu1 %v527_v47, %s1644_s19  ;;  %962 = vperm.xlu0 %1620, %v959_v46  }
 0x107   : > { %v647_v48 = vpop.permute.xlu0 %646  ;;  %v643_v49 = vpop.permute.xlu1 %642 }
 0x108   : > { %v714_v51 = vsel %vm712_vm9, %v645_v45, %v647_v48  ;;  %v713_v52 = vsel %vm712_vm9, %v643_v49, %v645_v45 }
 0x109   : > { %796 = vmatprep.subr.bf16.mxu0 %v714_v51 }
 0x10a   : > { %797 = vmatpush1.bf16.msra.mxu0 %v713_v52  ;;  %975 = vperm.xlu1 %1621, %v972_v50  }
 0x10b   : > { %v649_v53 = vpop.permute.xlu0 %648  ;;  %v1993_v55 = vpop.permute.xlu1 %650 }
 0x10c   : > { %v716_v56 = vsel %vm712_vm9, %v649_v53, %v1993_v55  ;;  %v715_v57 = vsel %vm712_vm9, %v647_v48, %v649_v53 }
 0x10d   : > { %837 = vmatprep.subr.bf16.mxu1 %v716_v56 }
 0x10e   : > { %838 = vmatpush1.bf16.msra.mxu1 %v715_v57  ;;  %v994_v57 = vlaneseq }
 0x110   : > { %v659_v58 = vpop.permute.xlu0 %658  ;;  %v661_v59 = vpop.permute.xlu1 %660 }
 0x111   : > { %v720_v61 = vsel %vm712_vm9, %v659_v58, %v661_v59 }
 0x112   : > { %798 = vmatprep.subr.bf16.mxu0 %v720_v61  ;;  %v2056_v61 = vld [vmem:[%s2385_s7] sm:$0x7f] }
 0x118   : > { %v657_v63 = vpop.permute.xlu0 %656 }
 0x119   : > { %v719_v0 = vsel %vm712_vm9, %v657_v63, %v659_v58  ;;  %v2050_v58 = vshrl.u32 %v994_v57, 7 }
 0x11a   : > { %799 = vmatpush1.bf16.msra.mxu0 %v719_v0 }
 0x11b   : > { %v1020_v57 = vsub.s32 6, %v2050_v58 }
 0x11c   : > { %v2000_v1 = vpop.permute.xlu0 %664  ;;  %v663_v2 = vpop.permute.xlu1 %662 }
 0x11d   : > { %v722_v3 = vsel %vm712_vm9, %v663_v2, %v2000_v1  ;;  %v721_v4 = vsel %vm712_vm9, %v661_v59, %v663_v2  ;;  %v1016_v59 = vsub.s32 5, %v2050_v58 }
 0x11e   : > { %839 = vmatprep.subr.bf16.mxu1 %v722_v3 }
 0x11f   : > { %840 = vmatpush1.bf16.msra.mxu1 %v721_v4  ;;  %v2059_v63 = vrot.slane %v2056_v61, %v1016_v59 }
 0x128   : > { %v675_v5 = vpop.permute.xlu0 %674  ;;  %v673_v6 = vpop.permute.xlu1 %672 }
 0x129   : > { %v726_v7 = vsel %vm712_vm9, %v673_v6, %v675_v5 }
 0x12a   : > { %800 = vmatprep.subr.bf16.mxu0 %v726_v7 }
 0x130   : > { %v671_v8 = vpop.permute.xlu1 %670 }
 0x131   : > { %v725_v9 = vsel %vm712_vm9, %v671_v8, %v673_v6 }
 0x132   : > { %801 = vmatpush1.bf16.msra.mxu0 %v725_v9  ;;  %v1004_v9 = vsub.s32 2, %v2050_v58 }
 0x134   : > { %v677_v10 = vpop.permute.xlu0 %676  ;;  %v2007_v11 = vpop.permute.xlu1 %678 }
 0x135   : > { %v728_v12 = vsel %vm712_vm9, %v677_v10, %v2007_v11  ;;  %v727_v13 = vsel %vm712_vm9, %v675_v5, %v677_v10 }
 0x136   : > { %841 = vmatprep.subr.bf16.mxu1 %v728_v12 }
 0x137   : > { %842 = vmatpush1.bf16.msra.mxu1 %v727_v13 }
 0x140   : > { %v687_v14 = vpop.permute.xlu0 %686  ;;  %v689_v16 = vpop.permute.xlu1 %688 }
 0x141   : > { %v732_v30 = vsel %vm712_vm9, %v687_v14, %v689_v16 }
 0x142   : > { %802 = vmatprep.subr.bf16.mxu0 %v732_v30 }
 0x148   : > { %v685_v17 = vpop.permute.xlu0 %684 }
 0x149   : > { %v731_v15 = vsel %vm712_vm9, %v685_v17, %v687_v14  ;;  %v1005_v17 = vrot.slane %v2056_v61, %v1004_v9  ;;  %v1470_v9 = vld [vmem:[%s2384_s6] sm:$0xff] }
 0x14a   : > { %803 = vmatpush1.bf16.msra.mxu0 %v731_v15 }
 0x14c   : > { %v693_v20 = vpop.permute.xlu0 %692  ;;  %v691_v21 = vpop.permute.xlu1 %690 }
 0x14d   : > { %v734_v22 = vsel %vm712_vm9, %v691_v21, %v693_v20  ;;  %v733_v23 = vsel %vm712_vm9, %v689_v16, %v691_v21 }
 0x14e   : > { %843 = vmatprep.subr.bf16.mxu1 %v734_v22 }
 0x14f   : > { %844 = vmatpush1.bf16.msra.mxu1 %v733_v23 }
 0x150   : > { %v701_v19 = vpop.permute.xlu0 %700  ;;  %v699_v24 = vpop.permute.xlu1 %698 }
 0x151   : > { %v737_v26 = vsel %vm712_vm9, %v699_v24, %v701_v19 }
 0x152   : > { %v776_v28 = vsel %vm528_vm1, %v737_v26, 0 }
 0x154   : > { %v705_v27 = vpop.permute.xlu0 %704  ;;  %v703_v54 = vpop.permute.xlu1 %702 }
 0x155   : > { %v738_v60 = vsel %vm712_vm9, %v701_v19, %v703_v54  ;;  %v739_v29 = vsel %vm712_vm9, %v703_v54, %v705_v27  ;;  %v1000_v54 = vsub.s32 1, %v2050_v58 }
 0x156   : > { %1563 = vmatprep.subr.msk.bf16.mxu0 %vm528_vm1, %v738_v60  ;;  %v782_v34 = vsel %vm528_vm1, %v739_v29, 0  ;;  %v1008_v29 = vsub.s32 3, %v2050_v58 }
 0x157   : > { %805 = vmatpush1.bf16.msra.mxu0 %v776_v28 }
 0x158   : > { %v707_v32 = vpop.permute.xlu1 %706  ;;  %v653_v35 = vpop.permute.xlu0 %652 }
 0x159   : > { %v740_v33 = vsel %vm712_vm9, %v705_v27, %v707_v32  ;;  %v717_v37 = vsel %vm712_vm9, %v1993_v55, %v653_v35 }
 0x15a   : > { %1564 = vmatmul.mubr.msk.bf16.vlgmr.msra.gmra.mrb[0].mxu0 %vm771_vm10, %v613_v31  ;;  %1565 = vmatprep.subr.msk.bf16.mxu1 %vm528_vm1, %v740_v33  ;;  %v1009_v33 = vrot.slane %v2056_v61, %v1008_v29 }
 0x15b   : > { %846 = vmatpush1.bf16.msra.mxu1 %v782_v34  ;;  %910 = vmatprep.mubr.bf16.mxu0 %v1645_v62 }
 0x15c   : > { %v655_v36 = vpop.permute.xlu1 %654  ;;  %1585 = vmatprep.subr.bf16.mxu1 %v1646_v18 }
 0x15d   : > { %v718_v25 = vsel %vm712_vm9, %v653_v35, %v655_v36 }
 0x15e   : > { %1566 = vmatmul.mubr.msk.bf16.vlgmr.msra.gmra.mrb[0].mxu1 %vm771_vm10, %v613_v31  ;;  %878 = vmatprep.subr.bf16.mxu0 %v718_v25 }
 0x15f   : > { %879 = vmatpush1.bf16.msra.mxu0 %v717_v37  ;;  %1586 = vmatpush3.bf16.msra.mxu1 %v655_v36 }
 0x160   : > { %1587 = vmatprep.subr.bf16.mxu1 %v1646_v18  ;;  %1595 = vmatprep.mubr.msk.bf16.mxu1 %vm1647_vm11, %v1646_v18  ;;  %v667_v38 = vpop.permute.xlu0 %666 }
 0x161   : > { %v723_v41 = vsel %vm712_vm9, %v2000_v1, %v667_v38  ;;  %v996_v1 = vsub.s32 0, %v2050_v58 }
 0x163   : > { %v997_v10 = vrot.slane %v2056_v61, %v996_v1 }
 0x164   : > { %v669_v39 = vpop.permute.xlu1 %668 }
 0x165   : > { %v724_v40 = vsel %vm712_vm9, %v667_v38, %v669_v39  ;;  %1588 = vmatpush3.bf16.msra.mxu1 %v669_v39 }
 0x166   : > { %880 = vmatprep.subr.bf16.mxu0 %v724_v40  ;;  %1589 = vmatprep.subr.bf16.mxu1 %v1646_v18 }
 0x167   : > { %881 = vmatpush1.bf16.msra.mxu0 %v723_v41 }
 0x168   : > { %v681_v42 = vpop.permute.xlu0 %680 }
 0x169   : > { %v729_v45 = vsel %vm712_vm9, %v2007_v11, %v681_v42 }
 0x16c   : > { %v683_v43 = vpop.permute.xlu1 %682 }
 0x16d   : > { %v730_v44 = vsel %vm712_vm9, %v681_v42, %v683_v43  ;;  %1590 = vmatpush3.bf16.msra.mxu1 %v683_v43 }
 0x16e   : > { %882 = vmatprep.subr.bf16.mxu0 %v730_v44  ;;  %1591 = vmatprep.subr.bf16.mxu1 %v1646_v18 }
 0x16f   : > { %883 = vmatpush1.bf16.msra.mxu0 %v729_v45 }
 0x170   : > { %v695_v46 = vpop.permute.xlu0 %694 }
 0x171   : > { %v735_v50 = vsel %vm712_vm9, %v693_v20, %v695_v46 }
 0x174   : > { %v709_v47 = vpop.permute.xlu0 %708  ;;  %v697_v48 = vpop.permute.xlu1 %696 }
 0x175   : > { %v736_v49 = vsel %vm712_vm9, %v695_v46, %v697_v48  ;;  %1592 = vmatpush3.bf16.msra.mxu1 %v697_v48  ;;  %v741_v51 = vsel %vm712_vm9, %v707_v32, %v709_v47 }
 0x176   : > { %884 = vmatprep.subr.bf16.mxu0 %v736_v49  ;;  %1593 = vmatprep.subr.bf16.mxu1 %v1646_v18  ;;  %v788_v56 = vsel %vm528_vm1, %v741_v51, 0 }
 0x177   : > { %885 = vmatpush1.bf16.msra.mxu0 %v735_v50 }
 0x178   : > { %v711_v52 = vpop.permute.xlu1 %710 }
 0x179   : > { %v742_v53 = vsel %vm712_vm9, %v709_v47, %v711_v52  ;;  %v794_v55 = vsel %vm528_vm1, %v711_v52, 0 }
 0x17a   : > { %1567 = vmatprep.subr.msk.bf16.mxu0 %vm528_vm1, %v742_v53  ;;  %1594 = vmatpush3.bf16.msra.mxu1 %v794_v55  ;;  %v1012_v53 = vsub.s32 4, %v2050_v58 }
 0x17b   : > { %887 = vmatpush1.bf16.msra.mxu0 %v788_v56 }
 0x17c   : > { %v1013_v1 = vrot.slane %v2056_v61, %v1012_v53 }
 0x17d   : > { %1596 = vmatmul.mubr.msk.bf16.vlgmr.msra.gmra.mrb[4].mxu1 %vm771_vm10, %v613_v31 }
 0x17e   : > { %1568 = vmatmul.mubr.msk.bf16.vlgmr.msra.gmra.mrb[4].mxu0 %vm771_vm10, %v613_v31  ;;  %1408 = vmatprep.mubr.bf16.mxu1 %v1645_v62  ;;  %v1001_v31 = vrot.slane %v2056_v61, %v1000_v54 }
 0x17f   : > { %1367 = vmatprep.mubr.bf16.mxu0 %v1645_v62 }
 0x185   : > { %v2061_v0 = vpop.permute.xlu0 %962 }
 0x189   : > { %v2064_v3 = vpop.permute.xlu1 %975 }
 0x22d   : > { %v830_v2 = vpop.f32.mrb[0].mxu0 }
 0x22e   : > { %v965_v4 = vmul.f32 %v2061_v0, %v830_v2  ;;  %v832_v5 = vpop.f32.mrb[1].mxu0 }
 0x22f   : > { %v834_v6 = vpop.f32.mrb[2].mxu0  ;;  %v966_v21 = vmul.f32 %v2061_v0, %v832_v5 }
 0x230   : > { %v978_v7 = vadd.f32 %v2064_v3, %v965_v4  ;;  %v835_v8 = vpop.f32.mrb[3].mxu0 }
 0x231   : > { %v871_v11 = vpop.f32.mrb[0].mxu1  ;;  %v979_v24 = vadd.f32 %v2064_v3, %v966_v21 }
 0x232   : > { %v985_v12 = vmax.f32 %v978_v7, 0.0  ;;  %v967_v13 = vmul.f32 %v2061_v0, %v871_v11  ;;  %v873_v14 = vpop.f32.mrb[1].mxu1 }
 0x233   : > { %v875_v16 = vpop.f32.mrb[2].mxu1  ;;  %v968_v27 = vmul.f32 %v2061_v0, %v873_v14  ;;  %v986_v60 = vmax.f32 %v979_v24, 0.0 }
 0x234   : > { %v980_v30 = vadd.f32 %v2064_v3, %v967_v13  ;;  %v876_v15 = vpop.f32.mrb[3].mxu1  ;;  %v1029_v20 = vmul.f32 %v997_v10, %v985_v12  ;;  %v1458_v10 = vld [vmem:[%s2383_s5] sm:$0xff] }
 0x235   : > { %v981_v28 = vadd.f32 %v2064_v3, %v968_v27  ;;  %v1030_v34 = vmul.f32 %v1001_v31, %v986_v60 }
 0x236   : > { %v987_v22 = vmax.f32 %v980_v30, 0.0  ;;  %v2074_v23 = vpack.c.bf16 %v1029_v20, %v1029_v20 }
 0x237   : > { %v988_v32 = vmax.f32 %v981_v28, 0.0  ;;  %v2099_v36 = vpack.c.bf16 %v1030_v34, %v1030_v34 }
 0x238   : > { %v1031_v19 = vmul.f32 %v1005_v17, %v987_v22  ;;  %1077 = vrot.lane.b32.xlu0 %v2074_v23, %s1637_s12  ;;  %v1050_v48 = vrot.slane %v2074_v23, 4 }
 0x239   : > { %v1032_v35 = vmul.f32 %v1009_v33, %v988_v32  ;;  %v1051_v55 = vrot.slane %v2099_v36, 4 }
 0x23a   : > { %v2079_v26 = vpack.c.bf16 %v1031_v19, %v1031_v19 }
 0x23b   : > { %v2105_v18 = vpack.c.bf16 %v1032_v35, %v1032_v35 }
 0x23c   : > { %1081 = vrot.lane.b32.xlu1 %v2079_v26, %s1637_s12  ;;  %1117 = vrot.lane.b32.xlu0 %v2074_v23, %s1639_s14  ;;  %v1052_v47 = vrot.slane %v2079_v26, 4 }
 0x240   : > { %1121 = vrot.lane.b32.xlu1 %v2079_v26, %s1639_s14  ;;  %1157 = vrot.lane.b32.xlu0 %v2074_v23, %s1641_s16 }
 0x244   : > { %1161 = vrot.lane.b32.xlu1 %v2079_v26, %s1641_s16  ;;  %1197 = vrot.lane.b32.xlu0 %v2074_v23, %s1643_s18 }
 0x248   : > { %1199 = vrot.lane.b32.xlu1 %v2099_v36, %s1643_s18  ;;  %1201 = vrot.lane.b32.xlu0 %v2079_v26, %s1643_s18 }
 0x24c   : > { %1083 = vrot.lane.b32.xlu1 %v2105_v18, %s1637_s12  ;;  %1079 = vrot.lane.b32.xlu0 %v2099_v36, %s1637_s12 }
 0x250   : > { %v953_v25 = vpop.f32.mrb[4].mxu1  ;;  %1123 = vrot.lane.b32.xlu1 %v2105_v18, %s1639_s14  ;;  %1119 = vrot.lane.b32.xlu0 %v2099_v36, %s1639_s14 }
 0x251   : > { %v912_v37 = vpop.f32.mrb[4].mxu0  ;;  %v1597_v38 = vpop.f32.mrb[5].mxu1  ;;  %v971_v51 = vmul.f32 %v2061_v0, %v953_v25 }
 0x252   : > { %v914_v39 = vpop.f32.mrb[5].mxu0  ;;  %v956_v40 = vpop.f32.mrb[6].mxu1  ;;  %v969_v46 = vmul.f32 %v2061_v0, %v912_v37 }
 0x253   : > { %v970_v41 = vmul.f32 %v2061_v0, %v914_v39  ;;  %v916_v42 = vpop.f32.mrb[6].mxu0  ;;  %v1598_v43 = vpop.f32.mrb[7].mxu1  ;;  %v984_v56 = vadd.f32 %v2064_v3, %v971_v51  ;;  %v1021_v0 = vrot.slane %v2056_v61, %v1020_v57  ;;  %v1053_v61 = vrot.slane %v2105_v18, 4 }
 0x254   : > { %1163 = vrot.lane.b32.xlu1 %v2105_v18, %s1641_s16  ;;  %1159 = vrot.lane.b32.xlu0 %v2099_v36, %s1641_s16  ;;  %v917_v44 = vpop.f32.mrb[7].mxu0  ;;  %v982_v52 = vadd.f32 %v2064_v3, %v969_v46 }
 0x255   : > { %v983_v45 = vadd.f32 %v2064_v3, %v970_v41 }
 0x256   : > { %v989_v59 = vmax.f32 %v982_v52, 0.0 }
 0x257   : > { %v990_v49 = vmax.f32 %v983_v45, 0.0 }
 0x258   : > { %1061 = vrot.lane.b32.xlu0 %v1052_v47, %s1636_s11  ;;  %1057 = vrot.lane.b32.xlu1 %v1050_v48, %s1636_s11  ;;  %v1033_v2 = vmul.f32 %v1013_v1, %v989_v59 }
 0x259   : > { %v1034_v50 = vmul.f32 %v2059_v63, %v990_v49  ;;  %v991_v63 = vmax.f32 %v984_v56, 0.0 }
 0x25a   : > { %v2141_v5 = vpack.c.bf16 %v1033_v2, %v1033_v2 }
 0x25b   : > { %v1035_v4 = vmul.f32 %v1021_v0, %v991_v63  ;;  %v2164_v7 = vpack.c.bf16 %v1034_v50, %v1034_v50 }
 0x25c   : > { %1099 = vrot.lane.b32.xlu0 %v1051_v55, %s1638_s13  ;;  %1101 = vrot.lane.b32.xlu1 %v1052_v47, %s1638_s13  ;;  %v1054_v3 = vrot.slane %v2141_v5, 4 }
 0x25d   : > { %v1042_v58 = vpack.c.bf16 %v1035_v4, %v1035_v4  ;;  %v1055_v8 = vrot.slane %v2164_v7, 4 }
 0x25f   : > { %v1056_v6 = vrot.slane %v1042_v58, 4 }
 0x260   : > { %1139 = vrot.lane.b32.xlu0 %v1051_v55, %s1640_s15  ;;  %1097 = vrot.lane.b32.xlu1 %v1050_v48, %s1638_s13 }
 0x264   : > { %1179 = vrot.lane.b32.xlu0 %v1051_v55, %s1642_s17  ;;  %1141 = vrot.lane.b32.xlu1 %v1052_v47, %s1640_s15 }
 0x268   : > { %1085 = vrot.lane.b32.xlu0 %v2141_v5, %s1637_s12  ;;  %1137 = vrot.lane.b32.xlu1 %v1050_v48, %s1640_s15 }
 0x26c   : > { %1089 = vrot.lane.b32.xlu0 %v1042_v58, %s1637_s12  ;;  %1181 = vrot.lane.b32.xlu1 %v1052_v47, %s1642_s17 }
 0x270   : > { %1125 = vrot.lane.b32.xlu0 %v2141_v5, %s1639_s14  ;;  %1177 = vrot.lane.b32.xlu1 %v1050_v48, %s1642_s17 }
 0x274   : > { %1129 = vrot.lane.b32.xlu0 %v1042_v58, %s1639_s14  ;;  %1059 = vrot.lane.b32.xlu1 %v1051_v55, %s1636_s11 }
 0x278   : > { %1165 = vrot.lane.b32.xlu0 %v2141_v5, %s1641_s16  ;;  %1063 = vrot.lane.b32.xlu1 %v1053_v61, %s1636_s11 }
 0x27c   : > { %1169 = vrot.lane.b32.xlu0 %v1042_v58, %s1641_s16  ;;  %1103 = vrot.lane.b32.xlu1 %v1053_v61, %s1638_s13 }
 0x280   : > { %1065 = vrot.lane.b32.xlu0 %v1054_v3, %s1636_s11  ;;  %1143 = vrot.lane.b32.xlu1 %v1053_v61, %s1640_s15 }
 0x284   : > { %1069 = vrot.lane.b32.xlu0 %v1056_v6, %s1636_s11  ;;  %1183 = vrot.lane.b32.xlu1 %v1053_v61, %s1642_s17 }
 0x288   : > { %1105 = vrot.lane.b32.xlu0 %v1054_v3, %s1638_s13  ;;  %1087 = vrot.lane.b32.xlu1 %v2164_v7, %s1637_s12 }
 0x28c   : > { %1109 = vrot.lane.b32.xlu0 %v1056_v6, %s1638_s13  ;;  %1127 = vrot.lane.b32.xlu1 %v2164_v7, %s1639_s14 }
 0x290   : > { %1145 = vrot.lane.b32.xlu0 %v1054_v3, %s1640_s15  ;;  %1167 = vrot.lane.b32.xlu1 %v2164_v7, %s1641_s16 }
 0x294   : > { %1149 = vrot.lane.b32.xlu0 %v1056_v6, %s1640_s15  ;;  %1067 = vrot.lane.b32.xlu1 %v1055_v8, %s1636_s11 }
 0x298   : > { %1185 = vrot.lane.b32.xlu0 %v1054_v3, %s1642_s17  ;;  %1107 = vrot.lane.b32.xlu1 %v1055_v8, %s1638_s13 }
 0x29c   : > { %1189 = vrot.lane.b32.xlu0 %v1056_v6, %s1642_s17  ;;  %1147 = vrot.lane.b32.xlu1 %v1055_v8, %s1640_s15  ;;  %s1599_s15 = smul.u32 48, %s2388_s28 }
 0x2a0   : > { %1205 = vrot.lane.b32.xlu0 %v2141_v5, %s1643_s18  ;;  %1187 = vrot.lane.b32.xlu1 %v1055_v8, %s1642_s17 }
 0x2a4   : > { %1209 = vrot.lane.b32.xlu0 %v1042_v58, %s1643_s18  ;;  %1203 = vrot.lane.b32.xlu1 %v2105_v18, %s1643_s18 }
 0x2a8   : > { %1473 = vperm.xlu0 %1620, %v1470_v9   ;;  %1207 = vrot.lane.b32.xlu1 %v2164_v7, %s1643_s18  ;;  %s2362_s18 = scalar_lea.vmem %s2386_s8, %s1599_s15 }
 0x2aa   : > { %v1078_v11 = vpop.permute.xlu0 %1077 }
 0x2ac   : > { %1461 = vperm.xlu1 %1621, %v1458_v10  }
 0x2ae   : > { %v2196_v12 = vpop.permute.xlu1 %1081  ;;  %v1118_v13 = vpop.permute.xlu0 %1117 }
 0x2b2   : > { %v1122_v14 = vpop.permute.xlu1 %1121  ;;  %v2198_v16 = vpop.permute.xlu0 %1157 }
 0x2b6   : > { %v1162_v30 = vpop.permute.xlu1 %1161  ;;  %v2200_v17 = vpop.permute.xlu0 %1197 }
 0x2ba   : > { %v2202_v15 = vpop.permute.xlu1 %1199  ;;  %v2204_v20 = vpop.permute.xlu0 %1201 }
 0x2be   : > { %v2206_v21 = vpop.permute.xlu1 %1083  ;;  %v1080_v22 = vpop.permute.xlu0 %1079 }
 0x2bf   : > { %v1092_v51 = vsel %vm379_vm2, %v1080_v22, %v2196_v12 }
 0x2c2   : > { %v2208_v19 = vpop.permute.xlu1 %1123  ;;  %v1120_v24 = vpop.permute.xlu0 %1119 }
 0x2c3   : > { %v2212_v27 = vsel %vm427_vm4, %v1122_v14, %v2208_v19  ;;  %v1131_v58 = vsel %vm427_vm4, %v1118_v13, %v1120_v24 }
 0x2c6   : > { %v2214_v54 = vpop.permute.xlu1 %1163  ;;  %v1160_v60 = vpop.permute.xlu0 %1159 }
 0x2c7   : > { %v2218_v28 = vsel %vm475_vm6, %v1162_v30, %v2214_v54  ;;  %v1172_v61 = vsel %vm475_vm6, %v1160_v60, %v1162_v30 }
 0x2ca   : > { %v1062_v29 = vpop.permute.xlu0 %1061  ;;  %v1058_v31 = vpop.permute.xlu1 %1057 }
 0x2ce   : > { %v1100_v32 = vpop.permute.xlu0 %1099  ;;  %v1102_v33 = vpop.permute.xlu1 %1101 }
 0x2cf   : > { %v1112_v46 = vsel %vm403_vm3, %v1100_v32, %v1102_v33 }
 0x2d0   : > { %v1247_v56 = vsel %vm528_vm1, %v1092_v51, %v1112_v46 }
 0x2d2   : > { %v1140_v34 = vpop.permute.xlu0 %1139  ;;  %v1098_v35 = vpop.permute.xlu1 %1097 }
 0x2d3   : > { %v1111_v52 = vsel %vm403_vm3, %v1098_v35, %v1100_v32 }
 0x2d6   : > { %v1180_v25 = vpop.permute.xlu0 %1179  ;;  %v2220_v37 = vpop.permute.xlu1 %1141 }
 0x2d7   : > { %v1152_v57 = vsel %vm451_vm5, %v1140_v34, %v2220_v37 }
 0x2da   : > { %v2222_v38 = vpop.permute.xlu0 %1085  ;;  %v1138_v39 = vpop.permute.xlu1 %1137 }
 0x2db   : > { %v1151_v1 = vsel %vm451_vm5, %v1138_v39, %v1140_v34 }
 0x2dc   : > { %v1267_v3 = vsel %vm528_vm1, %v1131_v58, %v1151_v1 }
 0x2de   : > { %v2224_v40 = vpop.permute.xlu0 %1089  ;;  %v2226_v41 = vpop.permute.xlu1 %1181 }
 0x2df   : > { %v1192_v4 = vsel %vm499_vm7, %v1180_v25, %v2226_v41 }
 0x2e2   : > { %v2228_v42 = vpop.permute.xlu0 %1125  ;;  %v1178_v43 = vpop.permute.xlu1 %1177 }
 0x2e3   : > { %v1191_v6 = vsel %vm499_vm7, %v1178_v43, %v1180_v25  ;;  %v1093_v25 = vsel %vm379_vm2, %v2196_v12, %v2206_v21  ;;  %v1134_v12 = vsel %vm427_vm4, %v2208_v19, %v2228_v42 }
 0x2e6   : > { %v2230_v44 = vpop.permute.xlu0 %1129  ;;  %v1060_v45 = vpop.permute.xlu1 %1059 }
 0x2e7   : > { %v1071_v47 = vsel %vm355_vm0, %v1058_v31, %v1060_v45  ;;  %v1072_v48 = vsel %vm355_vm0, %v1060_v45, %v1062_v29  ;;  %v1212_v31 = vsel %vm521_vm8, %v2202_v15, %v2204_v20 }
 0x2e8   : > { %v1223_v49 = vsel %vm528_vm1, %v2099_v36, %v1072_v48  ;;  %v1219_v50 = vsel %vm528_vm1, %v2074_v23, %v1071_v47  ;;  %v1091_v36 = vsel %vm379_vm2, %v1078_v11, %v1080_v22  ;;  %v1132_v23 = vsel %vm427_vm4, %v1120_v24, %v1122_v14 }
 0x2e9   : > { %1335 = vmatprep.subr.bf16.mxu0 %v1223_v49  ;;  %v1243_v59 = vsel %vm528_vm1, %v1091_v36, %v1111_v52  ;;  %v1271_v2 = vsel %vm528_vm1, %v1132_v23, %v1152_v57  ;;  %v1295_v11 = vsel %vm528_vm1, %v1172_v61, %v1192_v4  ;;  %v1171_v22 = vsel %vm475_vm6, %v2198_v16, %v1160_v60 }
 0x2ea   : > { %v2242_v53 = vpop.permute.xlu0 %1165  ;;  %1336 = vmatpush1.bf16.msra.mxu0 %v1219_v50  ;;  %v1064_v55 = vpop.permute.xlu1 %1063  ;;  %v1291_v30 = vsel %vm528_vm1, %v1171_v22, %v1191_v6 }
 0x2eb   : > { %1337 = vmatprep.subr.bf16.mxu0 %v1247_v56  ;;  %v1073_v8 = vsel %vm355_vm0, %v1062_v29, %v1064_v55  ;;  %v1211_v29 = vsel %vm521_vm8, %v2200_v17, %v2202_v15  ;;  %v2282_v17 = vld [vmem:[%s2380_s2] sm:$0xf]  ;;  %v1094_v15 = vsel %vm379_vm2, %v2206_v21, %v2222_v38  ;;  %v1174_v56 = vsel %vm475_vm6, %v2214_v54, %v2242_v53 }
 0x2ec   : > { %v1227_v24 = vsel %vm528_vm1, %v2079_v26, %v1073_v8 }
 0x2ee   : > { %v2251_v63 = vpop.permute.xlu0 %1169  ;;  %1338 = vmatpush1.bf16.msra.mxu0 %v1243_v59  ;;  %v1104_v0 = vpop.permute.xlu1 %1103 }
 0x2ef   : > { %1339 = vmatprep.subr.bf16.mxu0 %v1271_v2  ;;  %v1113_v60 = vsel %vm403_vm3, %v1102_v33, %v1104_v0 }
 0x2f0   : > { %v1251_v39 = vsel %vm528_vm1, %v1093_v25, %v1113_v60 }
 0x2f2   : > { %v1066_v9 = vpop.permute.xlu0 %1065  ;;  %1340 = vmatpush1.bf16.msra.mxu0 %v1267_v3  ;;  %v1144_v10 = vpop.permute.xlu1 %1143 }
 0x2f3   : > { %v1074_v14 = vsel %vm355_vm0, %v1064_v55, %v1066_v9  ;;  %1341 = vmatprep.subr.bf16.mxu0 %v1295_v11  ;;  %v1153_v46 = vsel %vm451_vm5, %v2220_v37, %v1144_v10 }
 0x2f4   : > { %v1231_v13 = vsel %vm528_vm1, %v2105_v18, %v1074_v14  ;;  %v1318_v18 = vsel %vm528_vm1, %v1211_v29, 0  ;;  %v1275_v50 = vsel %vm528_vm1, %v2212_v27, %v1153_v46 }
 0x2f5   : > { %1376 = vmatprep.subr.bf16.mxu1 %v1231_v13 }
 0x2f6   : > { %v1070_v32 = vpop.permute.xlu0 %1069  ;;  %1342 = vmatpush1.bf16.msra.mxu0 %v1291_v30  ;;  %1377 = vmatpush1.bf16.msra.mxu1 %v1227_v24  ;;  %v1184_v16 = vpop.permute.xlu1 %1183 }
 0x2f7   : > { %1570 = vmatprep.subr.msk.bf16.mxu0 %vm528_vm1, %v1212_v31  ;;  %v1193_v27 = vsel %vm499_vm7, %v2226_v41, %v1184_v16 }
 0x2fa   : > { %v1106_v34 = vpop.permute.xlu0 %1105  ;;  %1344 = vmatpush1.bf16.msra.mxu0 %v1318_v18  ;;  %v1088_v26 = vpop.permute.xlu1 %1087 }
 0x2fb   : > { %v1114_v35 = vsel %vm403_vm3, %v1104_v0, %v1106_v34  ;;  %v1095_v57 = vsel %vm379_vm2, %v2222_v38, %v1088_v26  ;;  %v1299_v38 = vsel %vm528_vm1, %v2218_v28, %v1193_v27 }
 0x2fc   : > { %v1255_v33 = vsel %vm528_vm1, %v1094_v15, %v1114_v35 }
 0x2fd   : > { %1571 = vmatmul.mubr.msk.bf16.vlgmr.msra.gmra.mrb[8].mxu0 %vm771_vm10, %v2282_v17  ;;  %1378 = vmatprep.subr.bf16.mxu1 %v1255_v33 }
 0x2fe   : > { %v1110_v43 = vpop.permute.xlu0 %1109  ;;  %1379 = vmatpush1.bf16.msra.mxu1 %v1251_v39  ;;  %v1128_v45 = vpop.permute.xlu1 %1127  ;;  %1449 = vmatprep.mubr.bf16.mxu0 %v1645_v62 }
 0x2ff   : > { %v1135_v4 = vsel %vm427_vm4, %v2228_v42, %v1128_v45  ;;  %v1136_v58 = vsel %vm427_vm4, %v1128_v45, %v2230_v44 }
 0x302   : > { %v1146_v47 = vpop.permute.xlu0 %1145  ;;  %v1168_v48 = vpop.permute.xlu1 %1167 }
 0x303   : > { %v1154_v21 = vsel %vm451_vm5, %v1144_v10, %v1146_v47  ;;  %v1176_v42 = vsel %vm475_vm6, %v1168_v48, %v2251_v63 }
 0x304   : > { %v1279_v49 = vsel %vm528_vm1, %v1134_v12, %v1154_v21 }
 0x305   : > { %1380 = vmatprep.subr.bf16.mxu1 %v1279_v49 }
 0x306   : > { %v1150_v51 = vpop.permute.xlu0 %1149  ;;  %1381 = vmatpush1.bf16.msra.mxu1 %v1275_v50  ;;  %v1068_v62 = vpop.permute.xlu1 %1067 }
 0x307   : > { %v1075_v52 = vsel %vm355_vm0, %v1066_v9, %v1068_v62  ;;  %v1076_v37 = vsel %vm355_vm0, %v1068_v62, %v1070_v32  ;;  %v1175_v9 = vsel %vm475_vm6, %v2242_v53, %v1168_v48 }
 0x308   : > { %v1239_v55 = vsel %vm528_vm1, %v2164_v7, %v1076_v37  ;;  %v1235_v19 = vsel %vm528_vm1, %v2141_v5, %v1075_v52  ;;  %v1096_v7 = vsel %vm379_vm2, %v1088_v26, %v2224_v40 }
 0x309   : > { %1417 = vmatprep.subr.bf16.mxu0 %v1239_v55 }
 0x30a   : > { %v1186_v36 = vpop.permute.xlu0 %1185  ;;  %1418 = vmatpush1.bf16.msra.mxu0 %v1235_v19  ;;  %v1108_v23 = vpop.permute.xlu1 %1107  ;;  %v1624_v19 = vld [vmem:[%s1707_s10 + $0x18] sm:$0xff] }
 0x30b   : > { %v1194_v59 = vsel %vm499_vm7, %v1184_v16, %v1186_v36  ;;  %v1115_v5 = vsel %vm403_vm3, %v1106_v34, %v1108_v23  ;;  %v1116_v1 = vsel %vm403_vm3, %v1108_v23, %v1110_v43  ;;  %v1622_v43 = vld [vmem:[%s1707_s10 + $0x8] sm:$0xff] }
 0x30c   : > { %v1303_v54 = vsel %vm528_vm1, %v1174_v56, %v1194_v59  ;;  %v1263_v0 = vsel %vm528_vm1, %v1096_v7, %v1116_v1  ;;  %v1259_v41 = vsel %vm528_vm1, %v1095_v57, %v1115_v5 }
 0x30d   : > { %1382 = vmatprep.subr.bf16.mxu1 %v1303_v54  ;;  %1419 = vmatprep.subr.bf16.mxu0 %v1263_v0 }
 0x30e   : > { %v1190_v2 = vpop.permute.xlu0 %1189  ;;  %1383 = vmatpush1.bf16.msra.mxu1 %v1299_v38  ;;  %1420 = vmatpush1.bf16.msra.mxu0 %v1259_v41  ;;  %v1148_v40 = vpop.permute.xlu1 %1147  ;;  %v1626_v38 = vld [vmem:[%s1707_s10 + $0x28] sm:$0xff] }
 0x30f   : > { %v1155_v61 = vsel %vm451_vm5, %v1146_v47, %v1148_v40  ;;  %v1156_v3 = vsel %vm451_vm5, %v1148_v40, %v1150_v51  ;;  %v1627_v40 = vld [vmem:[%s1707_s10 + $0x30] sm:$0xff] }
 0x310   : > { %v1287_v6 = vsel %vm528_vm1, %v1136_v58, %v1156_v3  ;;  %v1283_v8 = vsel %vm528_vm1, %v1135_v4, %v1155_v61 }
 0x311   : > { %1421 = vmatprep.subr.bf16.mxu0 %v1287_v6 }
 0x312   : > { %1422 = vmatpush1.bf16.msra.mxu0 %v1283_v8  ;;  %v1188_v28 = vpop.permute.xlu1 %1187  ;;  %v1206_v11 = vpop.permute.xlu0 %1205 }
 0x313   : > { %v1195_v10 = vsel %vm499_vm7, %v1186_v36, %v1188_v28  ;;  %v1196_v44 = vsel %vm499_vm7, %v1188_v28, %v1190_v2  ;;  %v1625_v36 = vld [vmem:[%s1707_s10 + $0x20] sm:$0xff] }
 0x314   : > { %v1311_v14 = vsel %vm528_vm1, %v1176_v42, %v1196_v44  ;;  %v1307_v22 = vsel %vm528_vm1, %v1175_v9, %v1195_v10 }
 0x315   : > { %1423 = vmatprep.subr.bf16.mxu0 %v1311_v14 }
 0x316   : > { %1424 = vmatpush1.bf16.msra.mxu0 %v1307_v22  ;;  %v1204_v13 = vpop.permute.xlu1 %1203  ;;  %v1210_v63 = vpop.permute.xlu0 %1209 }
 0x317   : > { %v1213_v30 = vsel %vm521_vm8, %v2204_v20, %v1204_v13  ;;  %v1214_v53 = vsel %vm521_vm8, %v1204_v13, %v1206_v11 }
 0x318   : > { %v1324_v24 = vsel %vm528_vm1, %v1213_v30, 0  ;;  %1572 = vmatprep.subr.msk.bf16.mxu1 %vm528_vm1, %v1214_v53 }
 0x319   : > { %1385 = vmatpush1.bf16.msra.mxu1 %v1324_v24 }
 0x31a   : > { %v1208_v29 = vpop.permute.xlu1 %1207 }
 0x31b   : > { %v1215_v31 = vsel %vm521_vm8, %v1206_v11, %v1208_v29  ;;  %v1216_v32 = vsel %vm521_vm8, %v1208_v29, %v1210_v63 }
 0x31c   : > { %v1330_v16 = vsel %vm528_vm1, %v1215_v31, 0  ;;  %1573 = vmatmul.mubr.msk.bf16.vlgmr.msra.gmra.mrb[8].mxu1 %vm771_vm10, %v2282_v17  ;;  %1574 = vmatprep.subr.msk.bf16.mxu0 %vm528_vm1, %v1216_v32 }
 0x31d   : > { %1426 = vmatpush1.bf16.msra.mxu0 %v1330_v16 }
 0x320   : > { %1575 = vmatmul.mubr.msk.bf16.vlgmr.msra.gmra.mrb[12].mxu0 %vm771_vm10, %v2282_v17  ;;  %v1623_v17 = vld [vmem:[%s1707_s10 + $0x10] sm:$0xff] }
 0x327   : > { %v1474_v26 = vpop.permute.xlu0 %1473 }
 0x32b   : > { %v1462_v20 = vpop.permute.xlu1 %1461 }
 0x3d0   : > { %v1369_v18 = vpop.f32.mrb[8].mxu0 }
 0x3d1   : > { %v1464_v60 = vmul.f32 %v1462_v20, %v1369_v18  ;;  %v1371_v34 = vpop.f32.mrb[9].mxu0 }
 0x3d2   : > { %v1465_v15 = vmul.f32 %v1462_v20, %v1371_v34  ;;  %v1373_v35 = vpop.f32.mrb[10].mxu0 }
 0x3d3   : > { %v1476_v25 = vadd.f32 %v1474_v26, %v1464_v60  ;;  %v1374_v33 = vpop.f32.mrb[11].mxu0 }
 0x3d4   : > { %v1477_v39 = vadd.f32 %v1474_v26, %v1465_v15 }
 0x3d5   : > { %v1482_v45 = vadd.f32 %v1622_v43, %v1476_v25 }
 0x3d6   : > { %v1483_v46 = vadd.f32 %v1623_v17, %v1477_v39 }
 0x3d7   : > { %v1488_v47 = vmax.f32 %v1482_v45, 0.0 }
 0x3d8   : > { %v1489_v48 = vmax.f32 %v1483_v46, 0.0 }
 0x3d9   : > { %1494 = vst [vmem:[%s2362_s18] sm:$0xff] %v1488_v47 }
 0x3da   : > { %1495 = vst [vmem:[%s2362_s18 + $0x8] sm:$0xff] %v1489_v48 }
 0x3ef   : > { %v1410_v12 = vpop.f32.mrb[8].mxu1 }
 0x3f0   : > { %v1466_v21 = vmul.f32 %v1462_v20, %v1410_v12  ;;  %v1412_v49 = vpop.f32.mrb[9].mxu1 }
 0x3f1   : > { %v1467_v50 = vmul.f32 %v1462_v20, %v1412_v49  ;;  %v1414_v51 = vpop.f32.mrb[10].mxu1 }
 0x3f2   : > { %v1478_v62 = vadd.f32 %v1474_v26, %v1466_v21  ;;  %v1415_v52 = vpop.f32.mrb[11].mxu1 }
 0x3f3   : > { %v1479_v37 = vadd.f32 %v1474_v26, %v1467_v50  ;;  %v1451_v55 = vpop.f32.mrb[12].mxu0 }
 0x3f4   : > { %v1484_v56 = vadd.f32 %v1624_v19, %v1478_v62  ;;  %v1468_v27 = vmul.f32 %v1462_v20, %v1451_v55  ;;  %v1453_v57 = vpop.f32.mrb[13].mxu0 }
 0x3f5   : > { %v1485_v23 = vadd.f32 %v1625_v36, %v1479_v37  ;;  %v1469_v7 = vmul.f32 %v1462_v20, %v1453_v57  ;;  %v1455_v59 = vpop.f32.mrb[14].mxu0 }
 0x3f6   : > { %v1490_v5 = vmax.f32 %v1484_v56, 0.0  ;;  %v1480_v1 = vadd.f32 %v1474_v26, %v1468_v27  ;;  %v1456_v54 = vpop.f32.mrb[15].mxu0 }
 0x3f7   : > { %v1491_v0 = vmax.f32 %v1485_v23, 0.0  ;;  %v1481_v41 = vadd.f32 %v1474_v26, %v1469_v7 }
 0x3f8   : > { %1496 = vst [vmem:[%s2362_s18 + $0x10] sm:$0xff] %v1490_v5  ;;  %v1486_v2 = vadd.f32 %v1626_v38, %v1480_v1 }
 0x3f9   : > { %1497 = vst [vmem:[%s2362_s18 + $0x18] sm:$0xff] %v1491_v0  ;;  %v1487_v4 = vadd.f32 %v1627_v40, %v1481_v41 }
 0x3fa   : > { %v1492_v58 = vmax.f32 %v1486_v2, 0.0 }
 0x3fb   : > { %v1493_v61 = vmax.f32 %v1487_v4, 0.0 }
 0x3fc   : > { %1498 = vst [vmem:[%s2362_s18 + $0x20] sm:$0xff] %v1492_v58 }
 0x3fd   : > { %1499 = vst [vmem:[%s2362_s18 + $0x28] sm:$0xff] %v1493_v61 }
 0x3fe PF: > { %s18_s27 = sadd.s32 1, %s1634_s27  }
 0x3ff   : > { %p15_p4 = scmp.ge.s32.totalorder %s18_s27, 4  }
 0x401   :  { %17 = sbr.rel (!%p15_p4) target bundleno = 1 (0x1), region = 82 }

</bundles_post_ra>
